<compile_context>
chip_gen: v7x
topology: tpu7x:2x2x1
jax: 0.10.0
libtpu: 0.0.40
codegen_flags: <defaults>
</compile_context>

<pallas_src>
import functools
import math

import jax
import jax.numpy as jnp
import numpy as np
from jax.experimental import pallas as pl
from jax.experimental.pallas import tpu as pltpu

DIM = 256
NUM_HEADS = 4
LN_EPS = 1e-5

# Abramowitz & Stegun 7.1.26 erf polynomial (max abs error ~1.5e-7) so the
# kernel matches PyTorch's exact (erf-based) nn.GELU().
_ERF_P = 0.3275911
_ERF_A = (0.254829592, -0.284496736, 1.421413741, -1.453152027, 1.061405429)


def _erf(x):
    sgn = jnp.where(x >= 0.0, 1.0, -1.0)
    a = jnp.abs(x)
    t = 1.0 / (1.0 + _ERF_P * a)
    poly = t * (_ERF_A[0] + t * (_ERF_A[1] + t * (_ERF_A[2]
               + t * (_ERF_A[3] + t * _ERF_A[4]))))
    return sgn * (1.0 - poly * jnp.exp(-a * a))


def _gelu_exact(x):
    return 0.5 * x * (1.0 + _erf(x * (1.0 / math.sqrt(2.0))))


def _layernorm(x, gamma, beta):
    mu = jnp.mean(x, axis=-1, keepdims=True)
    var = jnp.mean((x - mu) ** 2, axis=-1, keepdims=True)
    return (x - mu) * jax.lax.rsqrt(var + LN_EPS) * gamma + beta


def _fuser_kernel(q_ref, kv_ref, w_ref, vec_ref, out_ref, *, num_heads):
    Bt, Lq, D = q_ref.shape
    Lkv = kv_ref.shape[1]
    dh = D // num_heads
    scale = 1.0 / math.sqrt(dh)

    # Fold batch into the row (M) dimension for all dense layers.
    q = q_ref[...].reshape(Bt * Lq, D)          # f32
    kv = kv_ref[...].reshape(Bt * Lkv, D)       # f32

    vecs = vec_ref[...]                         # (10, D) f32
    gq, bq = vecs[0:1, :], vecs[1:2, :]
    gkv, bkv = vecs[2:3, :], vecs[3:4, :]
    biq, bik, biv = vecs[4:5, :], vecs[5:6, :], vecs[6:7, :]
    bo, b1, b2 = vecs[7:8, :], vecs[8:9, :], vecs[9:10, :]

    w = w_ref[...]                              # (D, 6*D) bf16, (in, out) layout
    wq = w[:, 0:D]
    wkv = w[:, D:3 * D]                         # fused K|V projection weights
    wo = w[:, 3 * D:4 * D]
    w1 = w[:, 4 * D:5 * D]
    w2 = w[:, 5 * D:6 * D]

    # Pre-norms (f32 statistics), then cast to bf16 for the MXU.
    qn = _layernorm(q, gq, bq).astype(jnp.bfloat16)
    kvn = _layernorm(kv, gkv, bkv).astype(jnp.bfloat16)

    # Projections: Q separately, K and V fused into one matmul.
    q_p = jnp.dot(qn, wq, preferred_element_type=jnp.float32) + biq      # (Bt*Lq, D)
    kvp = jnp.dot(kvn, wkv, preferred_element_type=jnp.float32)          # (Bt*Lkv, 2D)
    k_p = kvp[:, 0:D] + bik                                              # lane-aligned split
    v_p = kvp[:, D:2 * D] + biv

    q3 = q_p.reshape(Bt, Lq, D)
    k3 = k_p.reshape(Bt, Lkv, D)
    v3 = v_p.reshape(Bt, Lkv, D)

    # Per-head attention, batch-folded.  Head contexts are lane-concatenated
    # and projected with a single full-depth (M,256)@(256,256) matmul.
    ctx_heads = []
    for h in range(num_heads):
        lo, hi = h * dh, (h + 1) * dh
        qh = q3[:, :, lo:hi].astype(jnp.bfloat16)          # (Bt, Lq, dh)
        kh = k3[:, :, lo:hi].astype(jnp.bfloat16)          # (Bt, Lkv, dh)
        vh = v3[:, :, lo:hi].astype(jnp.bfloat16)
        s = jnp.einsum("bqd,bkd->bqk", qh, kh,
                       preferred_element_type=jnp.float32) * scale       # (Bt, Lq, Lkv)
        m = jnp.max(s, axis=-1, keepdims=True)
        e = jnp.exp(s - m)
        l = jnp.sum(e, axis=-1, keepdims=True)
        p = (e * pl.reciprocal(l, approx=True)).astype(jnp.bfloat16)
        # dropout(p=0.1) on attention weights: identity in eval mode.
        ctx_heads.append(jnp.einsum("bqk,bkd->bqd", p, vh,
                                    preferred_element_type=jnp.float32)) # (Bt, Lq, dh)

    ctx = jnp.concatenate(ctx_heads, axis=-1).reshape(Bt * Lq, D)
    fused = jnp.dot(ctx.astype(jnp.bfloat16), wo,
                    preferred_element_type=jnp.float32) + bo             # (Bt*Lq, D)

    # MLP head: Linear -> GELU (exact/erf) -> Linear.
    h1 = _gelu_exact(jnp.dot(fused.astype(jnp.bfloat16), w1,
                             preferred_element_type=jnp.float32) + b1)
    out = jnp.dot(h1.astype(jnp.bfloat16), w2,
                  preferred_element_type=jnp.float32) + b2

    out_ref[...] = out.reshape(Bt, Lq, D).astype(out_ref.dtype)


_VEC_ORDER = ("gq", "bq", "gkv", "bkv", "biq", "bik", "biv", "bo", "b1", "b2")
_W_ORDER = ("wq", "wk", "wv", "wo", "w1", "w2")


def pack_params(params):
    """Pack once at init (not per forward call).

    Weights: (out, in) -> (in, out), concatenated along the output axis, bf16
    for the MXU -> (D, 6D).  Bias/affine vectors -> (10, D) f32.
    """
    w_pack = jnp.concatenate([jnp.transpose(params[k]) for k in _W_ORDER],
                             axis=1).astype(jnp.bfloat16)                # (D, 6D)
    v_pack = jnp.concatenate([params[k].reshape(1, -1) for k in _VEC_ORDER],
                             axis=0).astype(jnp.float32)                 # (10, D)
    return w_pack, v_pack


def _choose_block_b(B, Lq, target_rows=512):
    """Largest divisor of B with block_b*Lq <= target_rows (grid=(1,) is fine:
    splitting tiny work across grid steps / TensorCores is pure overhead)."""
    best = 1
    for d in range(1, B + 1):
        if B % d == 0 and d * Lq <= target_rows:
            best = d
    return best


def cross_attention_fuser(query_tokens, key_value_tokens, w_pack, v_pack,
                          *, num_heads=NUM_HEADS):
    B, Lq, D = query_tokens.shape
    _, Lkv, _ = key_value_tokens.shape
    block_b = _choose_block_b(B, Lq)

    # Constant-index weight/vector operands: single-buffered (one 768 KB copy
    # resident in VMEM instead of two).
    w_spec = pl.BlockSpec(w_pack.shape, lambda b: (0, 0),
                          pipeline_mode=pl.Buffered(1))
    v_spec = pl.BlockSpec(v_pack.shape, lambda b: (0, 0),
                          pipeline_mode=pl.Buffered(1))

    return pl.pallas_call(
        functools.partial(_fuser_kernel, num_heads=num_heads),
        out_shape=jax.ShapeDtypeStruct((B, Lq, D), query_tokens.dtype),
        grid_spec=pltpu.PrefetchScalarGridSpec(
            num_scalar_prefetch=0,
            grid=(B // block_b,),
            in_specs=[
                pl.BlockSpec((block_b, Lq, D), lambda b: (b, 0, 0)),
                pl.BlockSpec((block_b, Lkv, D), lambda b: (b, 0, 0)),
                w_spec,
                v_spec,
            ],
            out_specs=pl.BlockSpec((block_b, Lq, D), lambda b: (b, 0, 0)),
        ),
        compiler_params=pltpu.CompilerParams(
            dimension_semantics=("parallel",)),
    )(query_tokens, key_value_tokens, w_pack, v_pack)


def init_params(key, dim=DIM):
    ks = jax.random.split(key, 16)
    n = lambda k, shape, s: (s * jax.random.normal(k, shape)).astype(jnp.float32)
    return {
        # LayerNorm affine params (PyTorch init: gamma=1, beta=0; perturbed).
        "gq": (jnp.ones((1, dim), jnp.float32) + n(ks[0], (1, dim), 0.01)),
        "bq": n(ks[1], (1, dim), 0.01),
        "gkv": (jnp.ones((1, dim), jnp.float32) + n(ks[2], (1, dim), 0.01)),
        "bkv": n(ks[3], (1, dim), 0.01),
        # MultiheadAttention in_proj (split) and out_proj.
        "wq": n(ks[4], (dim, dim), 0.02), "wk": n(ks[5], (dim, dim), 0.02),
        "wv": n(ks[6], (dim, dim), 0.02),
        "biq": n(ks[7], (1, dim), 0.01), "bik": n(ks[8], (1, dim), 0.01),
        "biv": n(ks[9], (1, dim), 0.01),
        "wo": n(ks[10], (dim, dim), 0.02), "bo": n(ks[11], (1, dim), 0.01),
        # MLP: Linear -> GELU -> Linear.
        "w1": n(ks[12], (dim, dim), 0.02), "b1": n(ks[13], (1, dim), 0.01),
        "w2": n(ks[14], (dim, dim), 0.02), "b2": n(ks[15], (1, dim), 0.01),
    }


def reference(q, kv, p, num_heads=NUM_HEADS):
    """Pure-JAX f32 reference of the PyTorch forward (eval mode)."""
    hp = jax.lax.Precision.HIGHEST

    def ln(x, g, b):
        mu = jnp.mean(x, -1, keepdims=True)
        var = jnp.mean((x - mu) ** 2, -1, keepdims=True)
        return (x - mu) * jax.lax.rsqrt(var + LN_EPS) * g + b

    def lin(x, w, b):
        return jnp.einsum("bld,ed->ble", x, w, precision=hp) + b

    qn = ln(q, p["gq"], p["bq"])
    kvn = ln(kv, p["gkv"], p["bkv"])
    qp = lin(qn, p["wq"], p["biq"])
    kp = lin(kvn, p["wk"], p["bik"])
    vp = lin(kvn, p["wv"], p["biv"])
    B, Lq, D = qp.shape
    Lk = kp.shape[1]
    dh = D // num_heads
    qh = qp.reshape(B, Lq, num_heads, dh)
    kh = kp.reshape(B, Lk, num_heads, dh)
    vh = vp.reshape(B, Lk, num_heads, dh)
    s = jnp.einsum("bqhd,bkhd->bhqk", qh, kh, precision=hp) / math.sqrt(dh)
    probs = jax.nn.softmax(s, axis=-1)
    ctx = jnp.einsum("bhqk,bkhd->bqhd", probs, vh, precision=hp).reshape(B, Lq, D)
    fused = lin(ctx, p["wo"], p["bo"])
    h1 = jax.nn.gelu(lin(fused, p["w1"], p["b1"]), approximate=False)
    return lin(h1, p["w2"], p["b2"])


if __name__ == "__main__":
    key = jax.random.PRNGKey(0)
    kq, kkv, kparam = jax.random.split(key, 3)

    B, Lq, Lkv = 2, 8, 16
    query_tokens = jax.random.normal(kq, (B, Lq, DIM), jnp.float32)
    key_value_tokens = jax.random.normal(kkv, (B, Lkv, DIM), jnp.float32)
    params = init_params(kparam)

    # Weights are packed exactly once (would be cached at module init in a
    # real pipeline), not inside the forward wrapper.
    w_pack, v_pack = pack_params(params)
    w_pack = jax.block_until_ready(w_pack)
    v_pack = jax.block_until_ready(v_pack)

    out = cross_attention_fuser(query_tokens, key_value_tokens, w_pack, v_pack)
    out = jax.block_until_ready(out)

    ref = jax.block_until_ready(reference(query_tokens, key_value_tokens, params))
    # bf16 MXU operands with f32 accumulation + approx softmax reciprocal:
    # rtol dominates for non-tiny outputs.
    np.testing.assert_allclose(np.asarray(out), np.asarray(ref),
                               rtol=2e-2, atol=2e-3)

    print("KERNEL_OK")
</pallas_src>

<mosaic_0001>
module attributes {stable_mosaic.version = 11 : i64} {
  func.func @_fuser_kernel(%arg0: i32, %arg1: memref<2x8x256xf32, #tpu.memory_space<vmem>>, %arg2: memref<2x16x256xf32, #tpu.memory_space<vmem>>, %arg3: memref<256x1536xbf16, #tpu.memory_space<vmem>>, %arg4: memref<10x256xf32, #tpu.memory_space<vmem>>, %arg5: memref<2x8x256xf32, #tpu.memory_space<vmem>>) attributes {dimension_semantics = [#tpu.dimension_semantics<parallel>], iteration_bounds = array<i64: 1>, scalar_prefetch = 0 : i64, scratch_operands = 0 : i64, tpu.core_type = #tpu.core_type<tc>, window_params = [{transform_indices = @transform_0, window_bounds = array<i64: 2, 8, 256>}, {transform_indices = @transform_1, window_bounds = array<i64: 2, 16, 256>}, {pipeline_mode = #tpu.pipeline_mode<synchronous>, transform_indices = @transform_2, window_bounds = array<i64: 256, 1536>}, {pipeline_mode = #tpu.pipeline_mode<synchronous>, transform_indices = @transform_3, window_bounds = array<i64: 10, 256>}, {transform_indices = @transform_4, window_bounds = array<i64: 2, 8, 256>}]} {
    %c0 = arith.constant 0 : index
    %c0_0 = arith.constant 0 : index
    %c0_1 = arith.constant 0 : index
    %0 = vector.load %arg1[%c0, %c0_0, %c0_1] : memref<2x8x256xf32, #tpu.memory_space<vmem>>, vector<2x8x256xf32>
    %1 = vector.shape_cast %0 : vector<2x8x256xf32> to vector<16x256xf32>
    %c0_2 = arith.constant 0 : index
    %c0_3 = arith.constant 0 : index
    %c0_4 = arith.constant 0 : index
    %2 = vector.load %arg2[%c0_2, %c0_3, %c0_4] : memref<2x16x256xf32, #tpu.memory_space<vmem>>, vector<2x16x256xf32>
    %3 = vector.shape_cast %2 : vector<2x16x256xf32> to vector<32x256xf32>
    %c0_5 = arith.constant 0 : index
    %c0_6 = arith.constant 0 : index
    %4 = vector.load %arg4[%c0_5, %c0_6] : memref<10x256xf32, #tpu.memory_space<vmem>>, vector<10x256xf32>
    %5 = vector.extract_strided_slice %4 {offsets = [0, 0], sizes = [1, 256], strides = [1, 1]} : vector<10x256xf32> to vector<1x256xf32>
    %6 = vector.extract_strided_slice %4 {offsets = [1, 0], sizes = [1, 256], strides = [1, 1]} : vector<10x256xf32> to vector<1x256xf32>
    %7 = vector.extract_strided_slice %4 {offsets = [2, 0], sizes = [1, 256], strides = [1, 1]} : vector<10x256xf32> to vector<1x256xf32>
    %8 = vector.extract_strided_slice %4 {offsets = [3, 0], sizes = [1, 256], strides = [1, 1]} : vector<10x256xf32> to vector<1x256xf32>
    %9 = vector.extract_strided_slice %4 {offsets = [4, 0], sizes = [1, 256], strides = [1, 1]} : vector<10x256xf32> to vector<1x256xf32>
    %10 = vector.extract_strided_slice %4 {offsets = [5, 0], sizes = [1, 256], strides = [1, 1]} : vector<10x256xf32> to vector<1x256xf32>
    %11 = vector.extract_strided_slice %4 {offsets = [6, 0], sizes = [1, 256], strides = [1, 1]} : vector<10x256xf32> to vector<1x256xf32>
    %12 = vector.extract_strided_slice %4 {offsets = [7, 0], sizes = [1, 256], strides = [1, 1]} : vector<10x256xf32> to vector<1x256xf32>
    %13 = vector.extract_strided_slice %4 {offsets = [8, 0], sizes = [1, 256], strides = [1, 1]} : vector<10x256xf32> to vector<1x256xf32>
    %14 = vector.extract_strided_slice %4 {offsets = [9, 0], sizes = [1, 256], strides = [1, 1]} : vector<10x256xf32> to vector<1x256xf32>
    %c0_7 = arith.constant 0 : index
    %c0_8 = arith.constant 0 : index
    %15 = vector.load %arg3[%c0_7, %c0_8] : memref<256x1536xbf16, #tpu.memory_space<vmem>>, vector<256x1536xbf16>
    %16 = vector.extract_strided_slice %15 {offsets = [0, 0], sizes = [256, 256], strides = [1, 1]} : vector<256x1536xbf16> to vector<256x256xbf16>
    %17 = vector.extract_strided_slice %15 {offsets = [0, 256], sizes = [256, 512], strides = [1, 1]} : vector<256x1536xbf16> to vector<256x512xbf16>
    %18 = vector.extract_strided_slice %15 {offsets = [0, 768], sizes = [256, 256], strides = [1, 1]} : vector<256x1536xbf16> to vector<256x256xbf16>
    %19 = vector.extract_strided_slice %15 {offsets = [0, 1024], sizes = [256, 256], strides = [1, 1]} : vector<256x1536xbf16> to vector<256x256xbf16>
    %20 = vector.extract_strided_slice %15 {offsets = [0, 1280], sizes = [256, 256], strides = [1, 1]} : vector<256x1536xbf16> to vector<256x256xbf16>
    %cst = arith.constant dense<0.000000e+00> : vector<16xf32>
    %21 = vector.multi_reduction <add>, %1, %cst [1] : vector<16x256xf32> to vector<16xf32>
    %22 = vector.shape_cast %21 : vector<16xf32> to vector<16x1xf32>
    %cst_9 = arith.constant 2.560000e+02 : f32
    %23 = vector.broadcast %cst_9 : f32 to vector<16x1xf32>
    %24 = arith.divf %22, %23 : vector<16x1xf32>
    %25 = vector.broadcast %24 : vector<16x1xf32> to vector<16x256xf32>
    %26 = arith.subf %1, %25 : vector<16x256xf32>
    %27 = arith.mulf %26, %26 : vector<16x256xf32>
    %cst_10 = arith.constant dense<0.000000e+00> : vector<16xf32>
    %28 = vector.multi_reduction <add>, %27, %cst_10 [1] : vector<16x256xf32> to vector<16xf32>
    %29 = vector.shape_cast %28 : vector<16xf32> to vector<16x1xf32>
    %cst_11 = arith.constant 2.560000e+02 : f32
    %30 = vector.broadcast %cst_11 : f32 to vector<16x1xf32>
    %31 = arith.divf %29, %30 : vector<16x1xf32>
    %32 = vector.broadcast %24 : vector<16x1xf32> to vector<16x256xf32>
    %33 = arith.subf %1, %32 : vector<16x256xf32>
    %cst_12 = arith.constant 9.99999974E-6 : f32
    %34 = vector.broadcast %cst_12 : f32 to vector<16x1xf32>
    %35 = arith.addf %31, %34 : vector<16x1xf32>
    %36 = math.rsqrt %35 : vector<16x1xf32>
    %37 = vector.broadcast %36 : vector<16x1xf32> to vector<16x256xf32>
    %38 = arith.mulf %33, %37 : vector<16x256xf32>
    %39 = vector.broadcast %5 : vector<1x256xf32> to vector<16x256xf32>
    %40 = arith.mulf %38, %39 : vector<16x256xf32>
    %41 = vector.broadcast %6 : vector<1x256xf32> to vector<16x256xf32>
    %42 = arith.addf %40, %41 : vector<16x256xf32>
    %43 = arith.truncf %42 : vector<16x256xf32> to vector<16x256xbf16>
    %cst_13 = arith.constant dense<0.000000e+00> : vector<32xf32>
    %44 = vector.multi_reduction <add>, %3, %cst_13 [1] : vector<32x256xf32> to vector<32xf32>
    %45 = vector.shape_cast %44 : vector<32xf32> to vector<32x1xf32>
    %cst_14 = arith.constant 2.560000e+02 : f32
    %46 = vector.broadcast %cst_14 : f32 to vector<32x1xf32>
    %47 = arith.divf %45, %46 : vector<32x1xf32>
    %48 = vector.broadcast %47 : vector<32x1xf32> to vector<32x256xf32>
    %49 = arith.subf %3, %48 : vector<32x256xf32>
    %50 = arith.mulf %49, %49 : vector<32x256xf32>
    %cst_15 = arith.constant dense<0.000000e+00> : vector<32xf32>
    %51 = vector.multi_reduction <add>, %50, %cst_15 [1] : vector<32x256xf32> to vector<32xf32>
    %52 = vector.shape_cast %51 : vector<32xf32> to vector<32x1xf32>
    %cst_16 = arith.constant 2.560000e+02 : f32
    %53 = vector.broadcast %cst_16 : f32 to vector<32x1xf32>
    %54 = arith.divf %52, %53 : vector<32x1xf32>
    %55 = vector.broadcast %47 : vector<32x1xf32> to vector<32x256xf32>
    %56 = arith.subf %3, %55 : vector<32x256xf32>
    %cst_17 = arith.constant 9.99999974E-6 : f32
    %57 = vector.broadcast %cst_17 : f32 to vector<32x1xf32>
    %58 = arith.addf %54, %57 : vector<32x1xf32>
    %59 = math.rsqrt %58 : vector<32x1xf32>
    %60 = vector.broadcast %59 : vector<32x1xf32> to vector<32x256xf32>
    %61 = arith.mulf %56, %60 : vector<32x256xf32>
    %62 = vector.broadcast %7 : vector<1x256xf32> to vector<32x256xf32>
    %63 = arith.mulf %61, %62 : vector<32x256xf32>
    %64 = vector.broadcast %8 : vector<1x256xf32> to vector<32x256xf32>
    %65 = arith.addf %63, %64 : vector<32x256xf32>
    %66 = arith.truncf %65 : vector<32x256xf32> to vector<32x256xbf16>
    %cst_18 = arith.constant dense<0.000000e+00> : vector<16x256xf32>
    %67 = tpu.matmul %43, %16, %cst_18 {dimension_numbers = #tpu.dot_dimension_numbers<[1], [0], [0], [1], [0, 0, 1, 1], [], []>} : vector<16x256xbf16>, vector<256x256xbf16>, vector<16x256xf32> -> vector<16x256xf32>
    %68 = vector.broadcast %9 : vector<1x256xf32> to vector<16x256xf32>
    %69 = arith.addf %67, %68 : vector<16x256xf32>
    %cst_19 = arith.constant dense<0.000000e+00> : vector<32x512xf32>
    %70 = tpu.matmul %66, %17, %cst_19 {dimension_numbers = #tpu.dot_dimension_numbers<[1], [0], [0], [1], [0, 0, 1, 1], [], []>} : vector<32x256xbf16>, vector<256x512xbf16>, vector<32x512xf32> -> vector<32x512xf32>
    %71 = vector.extract_strided_slice %70 {offsets = [0, 0], sizes = [32, 256], strides = [1, 1]} : vector<32x512xf32> to vector<32x256xf32>
    %72 = vector.broadcast %10 : vector<1x256xf32> to vector<32x256xf32>
    %73 = arith.addf %71, %72 : vector<32x256xf32>
    %74 = vector.extract_strided_slice %70 {offsets = [0, 256], sizes = [32, 256], strides = [1, 1]} : vector<32x512xf32> to vector<32x256xf32>
    %75 = vector.broadcast %11 : vector<1x256xf32> to vector<32x256xf32>
    %76 = arith.addf %74, %75 : vector<32x256xf32>
    %77 = vector.shape_cast %69 : vector<16x256xf32> to vector<2x8x256xf32>
    %78 = vector.shape_cast %73 : vector<32x256xf32> to vector<2x16x256xf32>
    %79 = vector.shape_cast %76 : vector<32x256xf32> to vector<2x16x256xf32>
    %80 = vector.extract_strided_slice %77 {offsets = [0, 0, 0], sizes = [2, 8, 64], strides = [1, 1, 1]} : vector<2x8x256xf32> to vector<2x8x64xf32>
    %81 = arith.truncf %80 : vector<2x8x64xf32> to vector<2x8x64xbf16>
    %82 = vector.extract_strided_slice %78 {offsets = [0, 0, 0], sizes = [2, 16, 64], strides = [1, 1, 1]} : vector<2x16x256xf32> to vector<2x16x64xf32>
    %83 = arith.truncf %82 : vector<2x16x64xf32> to vector<2x16x64xbf16>
    %84 = vector.extract_strided_slice %79 {offsets = [0, 0, 0], sizes = [2, 16, 64], strides = [1, 1, 1]} : vector<2x16x256xf32> to vector<2x16x64xf32>
    %85 = arith.truncf %84 : vector<2x16x64xf32> to vector<2x16x64xbf16>
    "tpu.trace_start"() <{level = 10 : i32, message = "bqd,bkd->bqk"}> : () -> ()
    %cst_20 = arith.constant dense<0.000000e+00> : vector<2x8x16xf32>
    %86 = tpu.matmul %81, %83, %cst_20 {dimension_numbers = #tpu.dot_dimension_numbers<[2], [2], [1], [1], [0, 0, 0, 1, 1, 1], [0], [0]>} : vector<2x8x64xbf16>, vector<2x16x64xbf16>, vector<2x8x16xf32> -> vector<2x8x16xf32>
    "tpu.trace_stop"() : () -> ()
    %cst_21 = arith.constant 1.250000e-01 : f32
    %87 = vector.broadcast %cst_21 : f32 to vector<2x8x16xf32>
    %88 = arith.mulf %86, %87 : vector<2x8x16xf32>
    %cst_22 = arith.constant dense<0xFF800000> : vector<2x8xf32>
    %89 = vector.multi_reduction <maximumf>, %88, %cst_22 [2] : vector<2x8x16xf32> to vector<2x8xf32>
    %90 = vector.shape_cast %89 : vector<2x8xf32> to vector<2x8x1xf32>
    %91 = vector.broadcast %90 : vector<2x8x1xf32> to vector<2x8x16xf32>
    %92 = arith.subf %88, %91 : vector<2x8x16xf32>
    %93 = math.exp %92 : vector<2x8x16xf32>
    %cst_23 = arith.constant dense<0.000000e+00> : vector<2x8xf32>
    %94 = vector.multi_reduction <add>, %93, %cst_23 [2] : vector<2x8x16xf32> to vector<2x8xf32>
    %95 = vector.shape_cast %94 : vector<2x8xf32> to vector<2x8x1xf32>
    %96 = tpu.reciprocal %95 {approx = true} : vector<2x8x1xf32> -> vector<2x8x1xf32>
    %97 = vector.broadcast %96 : vector<2x8x1xf32> to vector<2x8x16xf32>
    %98 = arith.mulf %93, %97 : vector<2x8x16xf32>
    %99 = arith.truncf %98 : vector<2x8x16xf32> to vector<2x8x16xbf16>
    "tpu.trace_start"() <{level = 10 : i32, message = "bqk,bkd->bqd"}> : () -> ()
    %cst_24 = arith.constant dense<0.000000e+00> : vector<2x8x64xf32>
    %100 = tpu.matmul %99, %85, %cst_24 {dimension_numbers = #tpu.dot_dimension_numbers<[2], [1], [1], [2], [0, 0, 0, 1, 1, 2], [0], [0]>} : vector<2x8x16xbf16>, vector<2x16x64xbf16>, vector<2x8x64xf32> -> vector<2x8x64xf32>
    "tpu.trace_stop"() : () -> ()
    %101 = vector.extract_strided_slice %77 {offsets = [0, 0, 64], sizes = [2, 8, 64], strides = [1, 1, 1]} : vector<2x8x256xf32> to vector<2x8x64xf32>
    %102 = arith.truncf %101 : vector<2x8x64xf32> to vector<2x8x64xbf16>
    %103 = vector.extract_strided_slice %78 {offsets = [0, 0, 64], sizes = [2, 16, 64], strides = [1, 1, 1]} : vector<2x16x256xf32> to vector<2x16x64xf32>
    %104 = arith.truncf %103 : vector<2x16x64xf32> to vector<2x16x64xbf16>
    %105 = vector.extract_strided_slice %79 {offsets = [0, 0, 64], sizes = [2, 16, 64], strides = [1, 1, 1]} : vector<2x16x256xf32> to vector<2x16x64xf32>
    %106 = arith.truncf %105 : vector<2x16x64xf32> to vector<2x16x64xbf16>
    "tpu.trace_start"() <{level = 10 : i32, message = "bqd,bkd->bqk"}> : () -> ()
    %cst_25 = arith.constant dense<0.000000e+00> : vector<2x8x16xf32>
    %107 = tpu.matmul %102, %104, %cst_25 {dimension_numbers = #tpu.dot_dimension_numbers<[2], [2], [1], [1], [0, 0, 0, 1, 1, 1], [0], [0]>} : vector<2x8x64xbf16>, vector<2x16x64xbf16>, vector<2x8x16xf32> -> vector<2x8x16xf32>
    "tpu.trace_stop"() : () -> ()
    %cst_26 = arith.constant 1.250000e-01 : f32
    %108 = vector.broadcast %cst_26 : f32 to vector<2x8x16xf32>
    %109 = arith.mulf %107, %108 : vector<2x8x16xf32>
    %cst_27 = arith.constant dense<0xFF800000> : vector<2x8xf32>
    %110 = vector.multi_reduction <maximumf>, %109, %cst_27 [2] : vector<2x8x16xf32> to vector<2x8xf32>
    %111 = vector.shape_cast %110 : vector<2x8xf32> to vector<2x8x1xf32>
    %112 = vector.broadcast %111 : vector<2x8x1xf32> to vector<2x8x16xf32>
    %113 = arith.subf %109, %112 : vector<2x8x16xf32>
    %114 = math.exp %113 : vector<2x8x16xf32>
    %cst_28 = arith.constant dense<0.000000e+00> : vector<2x8xf32>
    %115 = vector.multi_reduction <add>, %114, %cst_28 [2] : vector<2x8x16xf32> to vector<2x8xf32>
    %116 = vector.shape_cast %115 : vector<2x8xf32> to vector<2x8x1xf32>
    %117 = tpu.reciprocal %116 {approx = true} : vector<2x8x1xf32> -> vector<2x8x1xf32>
    %118 = vector.broadcast %117 : vector<2x8x1xf32> to vector<2x8x16xf32>
    %119 = arith.mulf %114, %118 : vector<2x8x16xf32>
    %120 = arith.truncf %119 : vector<2x8x16xf32> to vector<2x8x16xbf16>
    "tpu.trace_start"() <{level = 10 : i32, message = "bqk,bkd->bqd"}> : () -> ()
    %cst_29 = arith.constant dense<0.000000e+00> : vector<2x8x64xf32>
    %121 = tpu.matmul %120, %106, %cst_29 {dimension_numbers = #tpu.dot_dimension_numbers<[2], [1], [1], [2], [0, 0, 0, 1, 1, 2], [0], [0]>} : vector<2x8x16xbf16>, vector<2x16x64xbf16>, vector<2x8x64xf32> -> vector<2x8x64xf32>
    "tpu.trace_stop"() : () -> ()
    %122 = vector.extract_strided_slice %77 {offsets = [0, 0, 128], sizes = [2, 8, 64], strides = [1, 1, 1]} : vector<2x8x256xf32> to vector<2x8x64xf32>
    %123 = arith.truncf %122 : vector<2x8x64xf32> to vector<2x8x64xbf16>
    %124 = vector.extract_strided_slice %78 {offsets = [0, 0, 128], sizes = [2, 16, 64], strides = [1, 1, 1]} : vector<2x16x256xf32> to vector<2x16x64xf32>
    %125 = arith.truncf %124 : vector<2x16x64xf32> to vector<2x16x64xbf16>
    %126 = vector.extract_strided_slice %79 {offsets = [0, 0, 128], sizes = [2, 16, 64], strides = [1, 1, 1]} : vector<2x16x256xf32> to vector<2x16x64xf32>
    %127 = arith.truncf %126 : vector<2x16x64xf32> to vector<2x16x64xbf16>
    "tpu.trace_start"() <{level = 10 : i32, message = "bqd,bkd->bqk"}> : () -> ()
    %cst_30 = arith.constant dense<0.000000e+00> : vector<2x8x16xf32>
    %128 = tpu.matmul %123, %125, %cst_30 {dimension_numbers = #tpu.dot_dimension_numbers<[2], [2], [1], [1], [0, 0, 0, 1, 1, 1], [0], [0]>} : vector<2x8x64xbf16>, vector<2x16x64xbf16>, vector<2x8x16xf32> -> vector<2x8x16xf32>
    "tpu.trace_stop"() : () -> ()
    %cst_31 = arith.constant 1.250000e-01 : f32
    %129 = vector.broadcast %cst_31 : f32 to vector<2x8x16xf32>
    %130 = arith.mulf %128, %129 : vector<2x8x16xf32>
    %cst_32 = arith.constant dense<0xFF800000> : vector<2x8xf32>
    %131 = vector.multi_reduction <maximumf>, %130, %cst_32 [2] : vector<2x8x16xf32> to vector<2x8xf32>
    %132 = vector.shape_cast %131 : vector<2x8xf32> to vector<2x8x1xf32>
    %133 = vector.broadcast %132 : vector<2x8x1xf32> to vector<2x8x16xf32>
    %134 = arith.subf %130, %133 : vector<2x8x16xf32>
    %135 = math.exp %134 : vector<2x8x16xf32>
    %cst_33 = arith.constant dense<0.000000e+00> : vector<2x8xf32>
    %136 = vector.multi_reduction <add>, %135, %cst_33 [2] : vector<2x8x16xf32> to vector<2x8xf32>
    %137 = vector.shape_cast %136 : vector<2x8xf32> to vector<2x8x1xf32>
    %138 = tpu.reciprocal %137 {approx = true} : vector<2x8x1xf32> -> vector<2x8x1xf32>
    %139 = vector.broadcast %138 : vector<2x8x1xf32> to vector<2x8x16xf32>
    %140 = arith.mulf %135, %139 : vector<2x8x16xf32>
    %141 = arith.truncf %140 : vector<2x8x16xf32> to vector<2x8x16xbf16>
    "tpu.trace_start"() <{level = 10 : i32, message = "bqk,bkd->bqd"}> : () -> ()
    %cst_34 = arith.constant dense<0.000000e+00> : vector<2x8x64xf32>
    %142 = tpu.matmul %141, %127, %cst_34 {dimension_numbers = #tpu.dot_dimension_numbers<[2], [1], [1], [2], [0, 0, 0, 1, 1, 2], [0], [0]>} : vector<2x8x16xbf16>, vector<2x16x64xbf16>, vector<2x8x64xf32> -> vector<2x8x64xf32>
    "tpu.trace_stop"() : () -> ()
    %143 = vector.extract_strided_slice %77 {offsets = [0, 0, 192], sizes = [2, 8, 64], strides = [1, 1, 1]} : vector<2x8x256xf32> to vector<2x8x64xf32>
    %144 = arith.truncf %143 : vector<2x8x64xf32> to vector<2x8x64xbf16>
    %145 = vector.extract_strided_slice %78 {offsets = [0, 0, 192], sizes = [2, 16, 64], strides = [1, 1, 1]} : vector<2x16x256xf32> to vector<2x16x64xf32>
    %146 = arith.truncf %145 : vector<2x16x64xf32> to vector<2x16x64xbf16>
    %147 = vector.extract_strided_slice %79 {offsets = [0, 0, 192], sizes = [2, 16, 64], strides = [1, 1, 1]} : vector<2x16x256xf32> to vector<2x16x64xf32>
    %148 = arith.truncf %147 : vector<2x16x64xf32> to vector<2x16x64xbf16>
    "tpu.trace_start"() <{level = 10 : i32, message = "bqd,bkd->bqk"}> : () -> ()
    %cst_35 = arith.constant dense<0.000000e+00> : vector<2x8x16xf32>
    %149 = tpu.matmul %144, %146, %cst_35 {dimension_numbers = #tpu.dot_dimension_numbers<[2], [2], [1], [1], [0, 0, 0, 1, 1, 1], [0], [0]>} : vector<2x8x64xbf16>, vector<2x16x64xbf16>, vector<2x8x16xf32> -> vector<2x8x16xf32>
    "tpu.trace_stop"() : () -> ()
    %cst_36 = arith.constant 1.250000e-01 : f32
    %150 = vector.broadcast %cst_36 : f32 to vector<2x8x16xf32>
    %151 = arith.mulf %149, %150 : vector<2x8x16xf32>
    %cst_37 = arith.constant dense<0xFF800000> : vector<2x8xf32>
    %152 = vector.multi_reduction <maximumf>, %151, %cst_37 [2] : vector<2x8x16xf32> to vector<2x8xf32>
    %153 = vector.shape_cast %152 : vector<2x8xf32> to vector<2x8x1xf32>
    %154 = vector.broadcast %153 : vector<2x8x1xf32> to vector<2x8x16xf32>
    %155 = arith.subf %151, %154 : vector<2x8x16xf32>
    %156 = math.exp %155 : vector<2x8x16xf32>
    %cst_38 = arith.constant dense<0.000000e+00> : vector<2x8xf32>
    %157 = vector.multi_reduction <add>, %156, %cst_38 [2] : vector<2x8x16xf32> to vector<2x8xf32>
    %158 = vector.shape_cast %157 : vector<2x8xf32> to vector<2x8x1xf32>
    %159 = tpu.reciprocal %158 {approx = true} : vector<2x8x1xf32> -> vector<2x8x1xf32>
    %160 = vector.broadcast %159 : vector<2x8x1xf32> to vector<2x8x16xf32>
    %161 = arith.mulf %156, %160 : vector<2x8x16xf32>
    %162 = arith.truncf %161 : vector<2x8x16xf32> to vector<2x8x16xbf16>
    "tpu.trace_start"() <{level = 10 : i32, message = "bqk,bkd->bqd"}> : () -> ()
    %cst_39 = arith.constant dense<0.000000e+00> : vector<2x8x64xf32>
    %163 = tpu.matmul %162, %148, %cst_39 {dimension_numbers = #tpu.dot_dimension_numbers<[2], [1], [1], [2], [0, 0, 0, 1, 1, 2], [0], [0]>} : vector<2x8x16xbf16>, vector<2x16x64xbf16>, vector<2x8x64xf32> -> vector<2x8x64xf32>
    "tpu.trace_stop"() : () -> ()
    %164 = tpu.concatenate %100, %121, %142, %163 in 2 : vector<2x8x64xf32>, vector<2x8x64xf32>, vector<2x8x64xf32>, vector<2x8x64xf32> -> vector<2x8x256xf32>
    %165 = vector.shape_cast %164 : vector<2x8x256xf32> to vector<16x256xf32>
    %166 = arith.truncf %165 : vector<16x256xf32> to vector<16x256xbf16>
    %cst_40 = arith.constant dense<0.000000e+00> : vector<16x256xf32>
    %167 = tpu.matmul %166, %18, %cst_40 {dimension_numbers = #tpu.dot_dimension_numbers<[1], [0], [0], [1], [0, 0, 1, 1], [], []>} : vector<16x256xbf16>, vector<256x256xbf16>, vector<16x256xf32> -> vector<16x256xf32>
    %168 = vector.broadcast %12 : vector<1x256xf32> to vector<16x256xf32>
    %169 = arith.addf %167, %168 : vector<16x256xf32>
    %170 = arith.truncf %169 : vector<16x256xf32> to vector<16x256xbf16>
    %cst_41 = arith.constant dense<0.000000e+00> : vector<16x256xf32>
    %171 = tpu.matmul %170, %19, %cst_41 {dimension_numbers = #tpu.dot_dimension_numbers<[1], [0], [0], [1], [0, 0, 1, 1], [], []>} : vector<16x256xbf16>, vector<256x256xbf16>, vector<16x256xf32> -> vector<16x256xf32>
    %172 = vector.broadcast %13 : vector<1x256xf32> to vector<16x256xf32>
    %173 = arith.addf %171, %172 : vector<16x256xf32>
    %cst_42 = arith.constant 5.000000e-01 : f32
    %174 = vector.broadcast %cst_42 : f32 to vector<16x256xf32>
    %175 = arith.mulf %174, %173 : vector<16x256xf32>
    %cst_43 = arith.constant 0.707106769 : f32
    %176 = vector.broadcast %cst_43 : f32 to vector<16x256xf32>
    %177 = arith.mulf %173, %176 : vector<16x256xf32>
    %cst_44 = arith.constant 0.000000e+00 : f32
    %178 = vector.broadcast %cst_44 : f32 to vector<16x256xf32>
    %179 = arith.cmpf oge, %177, %178 : vector<16x256xf32>
    %cst_45 = arith.constant 1.000000e+00 : f32
    %cst_46 = arith.constant -1.000000e+00 : f32
    %180 = vector.broadcast %cst_45 : f32 to vector<16x256xf32>
    %181 = vector.broadcast %cst_46 : f32 to vector<16x256xf32>
    %182 = arith.select %179, %180, %181 : vector<16x256xi1>, vector<16x256xf32>
    %183 = math.absf %177 : vector<16x256xf32>
    %cst_47 = arith.constant 0.327591091 : f32
    %184 = vector.broadcast %cst_47 : f32 to vector<16x256xf32>
    %185 = arith.mulf %184, %183 : vector<16x256xf32>
    %cst_48 = arith.constant 1.000000e+00 : f32
    %186 = vector.broadcast %cst_48 : f32 to vector<16x256xf32>
    %187 = arith.addf %186, %185 : vector<16x256xf32>
    %cst_49 = arith.constant 1.000000e+00 : f32
    %188 = vector.broadcast %cst_49 : f32 to vector<16x256xf32>
    %189 = arith.divf %188, %187 : vector<16x256xf32>
    %cst_50 = arith.constant 1.06140542 : f32
    %190 = vector.broadcast %cst_50 : f32 to vector<16x256xf32>
    %191 = arith.mulf %189, %190 : vector<16x256xf32>
    %cst_51 = arith.constant -1.45315206 : f32
    %192 = vector.broadcast %cst_51 : f32 to vector<16x256xf32>
    %193 = arith.addf %192, %191 : vector<16x256xf32>
    %194 = arith.mulf %189, %193 : vector<16x256xf32>
    %cst_52 = arith.constant 1.42141378 : f32
    %195 = vector.broadcast %cst_52 : f32 to vector<16x256xf32>
    %196 = arith.addf %195, %194 : vector<16x256xf32>
    %197 = arith.mulf %189, %196 : vector<16x256xf32>
    %cst_53 = arith.constant -0.284496725 : f32
    %198 = vector.broadcast %cst_53 : f32 to vector<16x256xf32>
    %199 = arith.addf %198, %197 : vector<16x256xf32>
    %200 = arith.mulf %189, %199 : vector<16x256xf32>
    %cst_54 = arith.constant 0.254829586 : f32
    %201 = vector.broadcast %cst_54 : f32 to vector<16x256xf32>
    %202 = arith.addf %201, %200 : vector<16x256xf32>
    %203 = arith.mulf %189, %202 : vector<16x256xf32>
    %cst_55 = arith.constant 0.000000e+00 : f32
    %204 = vector.broadcast %cst_55 : f32 to vector<16x256xf32>
    %205 = arith.subf %204, %183 : vector<16x256xf32>
    %206 = arith.mulf %205, %183 : vector<16x256xf32>
    %207 = math.exp %206 : vector<16x256xf32>
    %208 = arith.mulf %203, %207 : vector<16x256xf32>
    %cst_56 = arith.constant 1.000000e+00 : f32
    %209 = vector.broadcast %cst_56 : f32 to vector<16x256xf32>
    %210 = arith.subf %209, %208 : vector<16x256xf32>
    %211 = arith.mulf %182, %210 : vector<16x256xf32>
    %cst_57 = arith.constant 1.000000e+00 : f32
    %212 = vector.broadcast %cst_57 : f32 to vector<16x256xf32>
    %213 = arith.addf %212, %211 : vector<16x256xf32>
    %214 = arith.mulf %175, %213 : vector<16x256xf32>
    %215 = arith.truncf %214 : vector<16x256xf32> to vector<16x256xbf16>
    %cst_58 = arith.constant dense<0.000000e+00> : vector<16x256xf32>
    %216 = tpu.matmul %215, %20, %cst_58 {dimension_numbers = #tpu.dot_dimension_numbers<[1], [0], [0], [1], [0, 0, 1, 1], [], []>} : vector<16x256xbf16>, vector<256x256xbf16>, vector<16x256xf32> -> vector<16x256xf32>
    %217 = vector.broadcast %14 : vector<1x256xf32> to vector<16x256xf32>
    %218 = arith.addf %216, %217 : vector<16x256xf32>
    %219 = vector.shape_cast %218 : vector<16x256xf32> to vector<2x8x256xf32>
    %c0_59 = arith.constant 0 : index
    %c0_60 = arith.constant 0 : index
    %c0_61 = arith.constant 0 : index
    %220 = vector.load %arg5[%c0_59, %c0_60, %c0_61] : memref<2x8x256xf32, #tpu.memory_space<vmem>>, vector<2x8x256xf32>
    tpu.vector_store %arg5[%c0_59, %c0_60, %c0_61], %219 {strides = array<i32>} : memref<2x8x256xf32, #tpu.memory_space<vmem>>, vector<2x8x256xf32>,
    return
  }
  func.func @transform_0(%arg0: i32) -> (i32, i32, i32) {
    %c0_i32 = arith.constant 0 : i32
    %c0_i32_0 = arith.constant 0 : i32
    %c0_i32_1 = arith.constant 0 : i32
    return %arg0, %c0_i32, %c0_i32_0 : i32, i32, i32
  }
  func.func @transform_1(%arg0: i32) -> (i32, i32, i32) {
    %c0_i32 = arith.constant 0 : i32
    %c0_i32_0 = arith.constant 0 : i32
    %c0_i32_1 = arith.constant 0 : i32
    return %arg0, %c0_i32, %c0_i32_0 : i32, i32, i32
  }
  func.func @transform_2(%arg0: i32) -> (i32, i32) {
    %c0_i32 = arith.constant 0 : i32
    %c0_i32_0 = arith.constant 0 : i32
    %c0_i32_1 = arith.constant 0 : i32
    return %c0_i32, %c0_i32_0 : i32, i32
  }
  func.func @transform_3(%arg0: i32) -> (i32, i32) {
    %c0_i32 = arith.constant 0 : i32
    %c0_i32_0 = arith.constant 0 : i32
    %c0_i32_1 = arith.constant 0 : i32
    return %c0_i32, %c0_i32_0 : i32, i32
  }
  func.func @transform_4(%arg0: i32) -> (i32, i32, i32) {
    %c0_i32 = arith.constant 0 : i32
    %c0_i32_0 = arith.constant 0 : i32
    %c0_i32_1 = arith.constant 0 : i32
    return %arg0, %c0_i32, %c0_i32_0 : i32, i32, i32
  }
}

</mosaic_0001>

<bundles_post_ra>
// kernel: tpu_custom_call.1
= control target key start
LH: loop header
LB: loop body
LE: loop exit
PB: predicated region body
PF: predicated region fallthrough
CT: control target
= control target key end

     0   :  { %9 = vsyncpa [#allocation3], 0  ;;  %s4120_s0 = inlined_call_operand.hbm [shape: f32[2,8,256], index: 0, kind: input, shape index: {}]   ;;  %s4121_s1 = inlined_call_operand.hbm [shape: f32[2,16,256], index: 1, kind: input, shape index: {}]   ;;  %s4122_s2 = inlined_call_operand.hbm [shape: bf16[256,1536], index: 2, kind: input, shape index: {}]   ;;  %s4123_s3 = inlined_call_operand.hbm [shape: f32[10,256], index: 3, kind: input, shape index: {}]   ;;  %s4124_s4 = inlined_call_operand.hbm [shape: f32[2,8,256], index: 4, kind: output, shape index: {}]  }
   0x1   :  { %10 = vsyncpa [#allocation6], 0 }
   0x2   :  { %11 = vsyncpa [#allocation9], 0 }
   0x3   :  { %12 = vsyncpa [#allocation4], 0  ;;  %s3629_s15 = smov [#allocation5]   ;;  %s3630_s17 = smov [#allocation2]  }
   0x4   :  { %s30_s16 = sshll.u32 %s3629_s15, 4  ;;  %s18_s18 = sshll.u32 %s3630_s17, 4  ;;  %s31_s16 = int_to_ptr.vmem [resolvable:$true] %s30_s16  ;;  %s3667_s18 = int_to_ptr.vmem [resolvable:$true] %s18_s18 }
   0x5   :  { %s3511_s21 = scalar_lea.hbm %s4121_s1, 1024 }
   0x6   :  { %p3512_p0 = scmp.ne.s32.totalorder %s4121_s1, %s3511_s21  ;;  %p3515_p1 = scmp.lt.u32.totalorder %s3511_s21, %s4121_s1 }
   0x8   :  { %p3517_p2 = pnand %p3515_p1, %p3512_p0 }
   0xa   :  { %3520 = shalt.err (!%p3517_p2)
}
   0xb   :  { %s3521_s26 = scalar_lea.vmem %s31_s16, 1024  ;;  %p3526_p4 = scmp.lt.s32.totalorder %s31_s16, %s31_s16 }
   0xc   :  { %p3522_p3 = scmp.ne.s32.totalorder %s31_s16, %s3521_s26  ;;  %p3527_p5 = scmp.lt.s32.totalorder %s3521_s26, %s3521_s26 }
   0xe   :  { %p3528_p6 = por %p3527_p5, %p3526_p4 }
  0x10   :  { %p3529_p7 = pnand %p3528_p6, %p3522_p3 }
  0x12   :  { %3532 = shalt.err (!%p3529_p7)
}
  0x13   :  { %s3631_s27 = smov 256   ;;  %s3632_s28 = smov 16  }
  0x14   :  { %36 = dma.hbm_to_vmem [thread:$0]  %s4121_s1, 1024, %s31_s16, [#allocation6], %s3631_s27, %s3631_s27, %s3632_s28  }
  0x15   :  { %s3533_s7 = scalar_lea.hbm %s4120_s0, 512 }
  0x16   :  { %p3534_p8 = scmp.ne.s32.totalorder %s4120_s0, %s3533_s7  ;;  %p3537_p9 = scmp.lt.u32.totalorder %s3533_s7, %s4120_s0 }
  0x18   :  { %p3539_p10 = pnand %p3537_p9, %p3534_p8 }
  0x1a   :  { %3542 = shalt.err (!%p3539_p10)
}
  0x1b   :  { %s3543_s12 = scalar_lea.vmem %s3667_s18, 512  ;;  %p3548_p12 = scmp.lt.s32.totalorder %s3667_s18, %s3667_s18 }
  0x1c   :  { %p3544_p11 = scmp.ne.s32.totalorder %s3667_s18, %s3543_s12  ;;  %p3549_p13 = scmp.lt.s32.totalorder %s3543_s12, %s3543_s12 }
  0x1e   :  { %p3550_p0 = por %p3549_p13, %p3548_p12 }
  0x20   :  { %p3551_p1 = pnand %p3550_p0, %p3544_p11 }
  0x22   :  { %3554 = shalt.err (!%p3551_p1)
}
  0x23   :  { %24 = dma.hbm_to_vmem [thread:$0]  %s4120_s0, 512, %s3667_s18, [#allocation3], %s3631_s27, %s3631_s27, %s3632_s28  }
  0x24   :  { %s3633_s14 = smov [#allocation7]   ;;  %s3555_s19 = scalar_lea.hbm %s4122_s2, 24576 }
  0x25   :  { %s42_s15 = sshll.u32 %s3633_s14, 4  ;;  %p3556_p2 = scmp.ne.s32.totalorder %s4122_s2, %s3555_s19  ;;  %s43_s15 = int_to_ptr.vmem [resolvable:$true] %s42_s15 }
  0x26   :  { %p3559_p3 = scmp.lt.u32.totalorder %s3555_s19, %s4122_s2 }
  0x28   :  { %p3561_p4 = pnand %p3559_p3, %p3556_p2 }
  0x2a   :  { %3564 = shalt.err (!%p3561_p4)
}
  0x2b   :  { %s3565_s24 = scalar_lea.vmem %s43_s15, 24576  ;;  %p3570_p6 = scmp.lt.s32.totalorder %s43_s15, %s43_s15 }
  0x2c   :  { %p3566_p5 = scmp.ne.s32.totalorder %s43_s15, %s3565_s24  ;;  %p3571_p7 = scmp.lt.s32.totalorder %s3565_s24, %s3565_s24 }
  0x2e   :  { %p3572_p8 = por %p3571_p7, %p3570_p6 }
  0x30   :  { %p3573_p9 = pnand %p3572_p8, %p3566_p5 }
  0x32   :  { %3576 = shalt.err (!%p3573_p9)
}
  0x33   :  { %s3634_s0 = smov 768   ;;  %s3635_s18 = smov 48  }
  0x34   :  { %48 = dma.hbm_to_vmem [thread:$0]  %s4122_s2, 24576, %s43_s15, [#allocation6], %s3634_s0, %s3634_s0, %s3635_s18  }
  0x35   :  { %s3636_s29 = smov [#allocation8]   ;;  %s3577_s7 = scalar_lea.hbm %s4123_s3, 512 }
  0x36   :  { %s54_s30 = sshll.u32 %s3636_s29, 4  ;;  %p3578_p10 = scmp.ne.s32.totalorder %s4123_s3, %s3577_s7  ;;  %s55_s30 = int_to_ptr.vmem [resolvable:$true] %s54_s30 }
  0x37   :  { %p3581_p11 = scmp.lt.u32.totalorder %s3577_s7, %s4123_s3 }
  0x39   :  { %p3583_p12 = pnand %p3581_p11, %p3578_p10 }
  0x3b   :  { %3586 = shalt.err (!%p3583_p12)
}
  0x3c   :  { %s3587_s12 = scalar_lea.vmem %s55_s30, 512  ;;  %p3592_p0 = scmp.lt.s32.totalorder %s55_s30, %s55_s30 }
  0x3d   :  { %p3588_p13 = scmp.ne.s32.totalorder %s55_s30, %s3587_s12  ;;  %p3593_p1 = scmp.lt.s32.totalorder %s3587_s12, %s3587_s12 }
  0x3f   :  { %p3594_p2 = por %p3593_p1, %p3592_p0 }
  0x41   :  { %p3595_p3 = pnand %p3594_p2, %p3588_p13 }
  0x43   :  { %3598 = shalt.err (!%p3595_p3)
}
  0x44   :  { %60 = dma.hbm_to_vmem [thread:$0]  %s4123_s3, 512, %s55_s30, [#allocation9], %s3631_s27, %s3631_s27, %s3632_s28  }
  0x45   :  { %3621 = dma.done.wait [#allocation3], 512  }
  0x46   :  { %3622 = vsyncadd [#allocation3], 4294966784 }
  0x47   :  { %3623 = dma.done.wait [#allocation6], 25600  }
  0x48   :  { %3624 = vsyncadd [#allocation6], 4294941696 }
  0x49   :  { %3625 = dma.done.wait [#allocation9], 512  }
  0x4a   :  { %3626 = vsyncadd [#allocation9], 4294966784  ;;  %v3731_v0 = vld [vmem:[#allocation5] sm:$0xff]  ;;  %v3733_v1 = vld [vmem:[#allocation5 + $0x8] sm:$0xff]  ;;  %vm3638_vm0 = vmmov 0   ;;  %vm1116_vm1 = vcmask 523264  }
  0x4b   :  { %v3735_v2 = vld [vmem:[#allocation5 + $0x20] sm:$0xff]  ;;  %v341_v3 = vadd.f32 %v3733_v1, %v3731_v0  ;;  %v3739_v4 = vld [vmem:[#allocation5 + $0x28] sm:$0xff]  ;;  %v3741_v5 = vld [vmem:[#allocation5 + $0x10] sm:$0xff]  ;;  %vm1211_vm2 = vcmask 130048   ;;  %s3639_s3 = smov 64   ;;  %s3641_s13 = smov [#allocation10]  }
  0x4c   :  { %v3743_v6 = vld [vmem:[#allocation5 + $0x18] sm:$0xff]  ;;  %v347_v7 = vadd.f32 %v3739_v4, %v3735_v2  ;;  %v3747_v8 = vld [vmem:[#allocation5 + $0x30] sm:$0xff]  ;;  %v3751_v10 = vld [vmem:[#allocation2] sm:$0xff]  ;;  %s2756_s14 = sshll.u32 %s3641_s13, 4  ;;  %s2757_s14 = int_to_ptr.vmem [resolvable:$true] %s2756_s14 }
  0x4d   :  { %v3749_v9 = vld [vmem:[#allocation5 + $0x38] sm:$0xff]  ;;  %342 = vadd.xlane.f32.xlu0 %v341_v3  ;;  %v344_v11 = vadd.f32 %v3743_v6, %v3741_v5  ;;  %v3755_v12 = vld [vmem:[#allocation2 + $0x8] sm:$0xff]  ;;  %v3757_v13 = vld [vmem:[#allocation2 + $0x10] sm:$0xff]  ;;  %s3599_s15 = scalar_lea.vmem %s2757_s14, 512  ;;  %p3604_p5 = scmp.lt.s32.totalorder %s2757_s14, %s2757_s14 }
  0x4e   :  { %v3759_v14 = vld [vmem:[#allocation2 + $0x18] sm:$0xff]  ;;  %348 = vadd.xlane.f32.xlu1 %v347_v7  ;;  %v350_v15 = vadd.f32 %v3749_v9, %v3747_v8  ;;  %v282_v16 = vadd.f32 %v3755_v12, %v3751_v10  ;;  %v3167_v21 = vld [vmem:[#allocation7 + $0x4] ss:$48 sps:$4 sm:$0xff]   ;;  %v3171_v22 = vld [vmem:[#allocation7] ss:$48 sps:$4 sm:$0xff]   ;;  %p3600_p4 = scmp.ne.s32.totalorder %s2757_s14, %s3599_s15  ;;  %p3605_p6 = scmp.lt.s32.totalorder %s3599_s15, %s3599_s15 }
  0x4f   :  { %v285_v17 = vadd.f32 %v3759_v14, %v3757_v13  ;;  %v3161_v18 = vld [vmem:[#allocation7 + $0xc] ss:$48 sps:$4 sm:$0xff]   ;;  %v3163_v19 = vld [vmem:[#allocation7 + $0x8] ss:$48 sps:$4 sm:$0xff]   ;;  %v3173_v23 = vld [vmem:[#allocation7 + $0x64] ss:$48 sps:$4 sm:$0xff]   ;;  %609 = vmatprep.subr.bf16.mxu0 %v3167_v21 }
  0x50   :  { %v3164_v20 = vld [vmem:[#allocation7 + $0x6c] ss:$48 sps:$4 sm:$0xff]   ;;  %972 = vmatprep.subr.bf16.mxu1 %v3161_v18  ;;  %v3166_v24 = vld [vmem:[#allocation7 + $0x68] ss:$48 sps:$4 sm:$0xff]   ;;  %610 = vmatpush1.bf16.msra.mxu0 %v3171_v22  ;;  %v3177_v26 = vld [vmem:[#allocation7 + $0x60] ss:$48 sps:$4 sm:$0xff]   ;;  %p3606_p7 = por %p3605_p6, %p3604_p5 }
  0x51   :  { %345 = vadd.xlane.f32.xlu0 %v344_v11  ;;  %973 = vmatpush1.bf16.msra.mxu1 %v3163_v19  ;;  %v3169_v25 = vld [vmem:[#allocation7 + $0xcc] ss:$48 sps:$4 sm:$0xff]   ;;  %v3179_v27 = vld [vmem:[#allocation7 + $0xc4] ss:$48 sps:$4 sm:$0xff]   ;;  %v3172_v28 = vld [vmem:[#allocation7 + $0xc8] ss:$48 sps:$4 sm:$0xff]  }
  0x52   :  { %351 = vadd.xlane.f32.xlu1 %v350_v15  ;;  %974 = vmatprep.subr.bf16.mxu1 %v3164_v20  ;;  %v3175_v29 = vld [vmem:[#allocation7 + $0x12c] ss:$48 sps:$4 sm:$0xff]   ;;  %v3183_v30 = vld [vmem:[#allocation7 + $0xc0] ss:$48 sps:$4 sm:$0xff]   ;;  %v3185_v31 = vld [vmem:[#allocation7 + $0x124] ss:$48 sps:$4 sm:$0xff]   ;;  %p3607_p8 = pnand %p3606_p7, %p3600_p4 }
  0x53   :  { %611 = vmatprep.subr.bf16.mxu0 %v3173_v23  ;;  %v3178_v32 = vld [vmem:[#allocation7 + $0x128] ss:$48 sps:$4 sm:$0xff]   ;;  %v3181_v33 = vld [vmem:[#allocation7 + $0x18c] ss:$48 sps:$4 sm:$0xff]   ;;  %v3189_v34 = vld [vmem:[#allocation7 + $0x120] ss:$48 sps:$4 sm:$0xff]  }
  0x54   :  { %612 = vmatpush1.bf16.msra.mxu0 %v3177_v26  ;;  %v3191_v35 = vld [vmem:[#allocation7 + $0x184] ss:$48 sps:$4 sm:$0xff]   ;;  %v3184_v36 = vld [vmem:[#allocation7 + $0x188] ss:$48 sps:$4 sm:$0xff]   ;;  %v3187_v37 = vld [vmem:[#allocation7 + $0x1ec] ss:$48 sps:$4 sm:$0xff]  }
  0x55   :  { %283 = vadd.xlane.f32.xlu0 %v282_v16  ;;  %975 = vmatpush1.bf16.msra.mxu1 %v3166_v24  ;;  %v3195_v38 = vld [vmem:[#allocation7 + $0x180] ss:$48 sps:$4 sm:$0xff]   ;;  %v3197_v39 = vld [vmem:[#allocation7 + $0x1e4] ss:$48 sps:$4 sm:$0xff]   ;;  %v3190_v40 = vld [vmem:[#allocation7 + $0x1e8] ss:$48 sps:$4 sm:$0xff]  }
  0x56   :  { %286 = vadd.xlane.f32.xlu1 %v285_v17  ;;  %976 = vmatprep.subr.bf16.mxu1 %v3169_v25  ;;  %v3193_v41 = vld [vmem:[#allocation7 + $0x24c] ss:$48 sps:$4 sm:$0xff]   ;;  %v3201_v42 = vld [vmem:[#allocation7 + $0x1e0] ss:$48 sps:$4 sm:$0xff]   ;;  %v3203_v43 = vld [vmem:[#allocation7 + $0x244] ss:$48 sps:$4 sm:$0xff]  }
  0x57   :  { %613 = vmatprep.subr.bf16.mxu0 %v3179_v27  ;;  %v3196_v44 = vld [vmem:[#allocation7 + $0x248] ss:$48 sps:$4 sm:$0xff]   ;;  %v3199_v45 = vld [vmem:[#allocation7 + $0x2ac] ss:$48 sps:$4 sm:$0xff]   ;;  %v3207_v46 = vld [vmem:[#allocation7 + $0x240] ss:$48 sps:$4 sm:$0xff]  }
  0x58   :  { %614 = vmatpush1.bf16.msra.mxu0 %v3183_v30  ;;  %v3209_v47 = vld [vmem:[#allocation7 + $0x2a4] ss:$48 sps:$4 sm:$0xff]   ;;  %v3202_v48 = vld [vmem:[#allocation7 + $0x2a8] ss:$48 sps:$4 sm:$0xff]   ;;  %v3205_v49 = vld [vmem:[#allocation7 + $0x30c] ss:$48 sps:$4 sm:$0xff]  }
  0x59   :  { %977 = vmatpush1.bf16.msra.mxu1 %v3172_v28  ;;  %615 = vmatprep.subr.bf16.mxu0 %v3185_v31  ;;  %v3208_v50 = vld [vmem:[#allocation7 + $0x308] ss:$48 sps:$4 sm:$0xff]   ;;  %v3211_v51 = vld [vmem:[#allocation7 + $0x36c] ss:$48 sps:$4 sm:$0xff]   ;;  %v3213_v30 = vld [vmem:[#allocation7 + $0x2a0] ss:$48 sps:$4 sm:$0xff]  }
  0x5a   :  { %978 = vmatprep.subr.bf16.mxu1 %v3175_v29  ;;  %v3214_v31 = vld [vmem:[#allocation7 + $0x368] ss:$48 sps:$4 sm:$0xff]  }
  0x5c   :  { %616 = vmatpush1.bf16.msra.mxu0 %v3189_v34  ;;  %v3219_v34 = vld [vmem:[#allocation7 + $0x300] ss:$48 sps:$4 sm:$0xff]  }
  0x5d   :  { %979 = vmatpush1.bf16.msra.mxu1 %v3178_v32  ;;  %617 = vmatprep.subr.bf16.mxu0 %v3191_v35  ;;  %v3215_v32 = vld [vmem:[#allocation7 + $0x304] ss:$48 sps:$4 sm:$0xff]   ;;  %v3220_v35 = vld [vmem:[#allocation7 + $0x3c8] ss:$48 sps:$4 sm:$0xff]  }
  0x5e   :  { %980 = vmatprep.subr.bf16.mxu1 %v3181_v33  ;;  %v3217_v33 = vld [vmem:[#allocation7 + $0x3cc] ss:$48 sps:$4 sm:$0xff]  }
  0x60   :  { %618 = vmatpush1.bf16.msra.mxu0 %v3195_v38  ;;  %v3225_v38 = vld [vmem:[#allocation7 + $0x360] ss:$48 sps:$4 sm:$0xff]  }
  0x61   :  { %981 = vmatpush1.bf16.msra.mxu1 %v3184_v36  ;;  %619 = vmatprep.subr.bf16.mxu0 %v3197_v39  ;;  %v3221_v36 = vld [vmem:[#allocation7 + $0x364] ss:$48 sps:$4 sm:$0xff]   ;;  %v3226_v39 = vld [vmem:[#allocation7 + $0x428] ss:$48 sps:$4 sm:$0xff]  }
  0x62   :  { %982 = vmatprep.subr.bf16.mxu1 %v3187_v37  ;;  %v3223_v37 = vld [vmem:[#allocation7 + $0x42c] ss:$48 sps:$4 sm:$0xff]  }
  0x64   :  { %620 = vmatpush1.bf16.msra.mxu0 %v3201_v42  ;;  %v3231_v42 = vld [vmem:[#allocation7 + $0x3c0] ss:$48 sps:$4 sm:$0xff]  }
  0x65   :  { %983 = vmatpush1.bf16.msra.mxu1 %v3190_v40  ;;  %621 = vmatprep.subr.bf16.mxu0 %v3203_v43  ;;  %v3227_v40 = vld [vmem:[#allocation7 + $0x3c4] ss:$48 sps:$4 sm:$0xff]   ;;  %v3232_v43 = vld [vmem:[#allocation7 + $0x488] ss:$48 sps:$4 sm:$0xff]  }
  0x66   :  { %984 = vmatprep.subr.bf16.mxu1 %v3193_v41  ;;  %v3229_v41 = vld [vmem:[#allocation7 + $0x48c] ss:$48 sps:$4 sm:$0xff]  }
  0x68   :  { %622 = vmatpush1.bf16.msra.mxu0 %v3207_v46  ;;  %v3237_v46 = vld [vmem:[#allocation7 + $0x420] ss:$48 sps:$4 sm:$0xff]  }
  0x69   :  { %985 = vmatpush1.bf16.msra.mxu1 %v3196_v44  ;;  %623 = vmatprep.subr.bf16.mxu0 %v3209_v47  ;;  %v3233_v44 = vld [vmem:[#allocation7 + $0x424] ss:$48 sps:$4 sm:$0xff]   ;;  %v3238_v47 = vld [vmem:[#allocation7 + $0x4e8] ss:$48 sps:$4 sm:$0xff]  }
  0x6a   :  { %986 = vmatprep.subr.bf16.mxu1 %v3199_v45  ;;  %v3235_v45 = vld [vmem:[#allocation7 + $0x4ec] ss:$48 sps:$4 sm:$0xff]  }
  0x6c   :  { %624 = vmatpush1.bf16.msra.mxu0 %v3213_v30 }
  0x6d   :  { %987 = vmatpush1.bf16.msra.mxu1 %v3202_v48  ;;  %625 = vmatprep.subr.bf16.mxu0 %v3215_v32  ;;  %v3239_v48 = vld [vmem:[#allocation7 + $0x484] ss:$48 sps:$4 sm:$0xff]  }
  0x6e   :  { %988 = vmatprep.subr.bf16.mxu1 %v3205_v49  ;;  %v3241_v49 = vld [vmem:[#allocation7 + $0x54c] ss:$48 sps:$4 sm:$0xff]  }
  0x70   :  { %626 = vmatpush1.bf16.msra.mxu0 %v3219_v34 }
  0x71   :  { %989 = vmatpush1.bf16.msra.mxu1 %v3208_v50  ;;  %627 = vmatprep.subr.bf16.mxu0 %v3221_v36  ;;  %v3243_v50 = vld [vmem:[#allocation7 + $0x480] ss:$48 sps:$4 sm:$0xff]  }
  0x72   :  { %990 = vmatprep.subr.bf16.mxu1 %v3211_v51  ;;  %v3244_v51 = vld [vmem:[#allocation7 + $0x548] ss:$48 sps:$4 sm:$0xff]  }
  0x74   :  { %628 = vmatpush1.bf16.msra.mxu0 %v3225_v38 }
  0x75   :  { %991 = vmatpush1.bf16.msra.mxu1 %v3214_v31  ;;  %629 = vmatprep.subr.bf16.mxu0 %v3227_v40 }
  0x76   :  { %992 = vmatprep.subr.bf16.mxu1 %v3217_v33 }
  0x78   :  { %630 = vmatpush1.bf16.msra.mxu0 %v3231_v42 }
  0x79   :  { %993 = vmatpush1.bf16.msra.mxu1 %v3220_v35  ;;  %631 = vmatprep.subr.bf16.mxu0 %v3233_v44 }
  0x7a   :  { %994 = vmatprep.subr.bf16.mxu1 %v3223_v37 }
  0x7c   :  { %632 = vmatpush1.bf16.msra.mxu0 %v3237_v46 }
  0x7d   :  { %995 = vmatpush1.bf16.msra.mxu1 %v3226_v39  ;;  %633 = vmatprep.subr.bf16.mxu0 %v3239_v48 }
  0x7e   :  { %996 = vmatprep.subr.bf16.mxu1 %v3229_v41 }
  0x80   :  { %634 = vmatpush1.bf16.msra.mxu0 %v3243_v50 }
  0x81   :  { %997 = vmatpush1.bf16.msra.mxu1 %v3232_v43 }
  0x82   :  { %998 = vmatprep.subr.bf16.mxu1 %v3235_v45 }
  0x85   :  { %999 = vmatpush1.bf16.msra.mxu1 %v3238_v47 }
  0x86   :  { %1000 = vmatprep.subr.bf16.mxu1 %v3241_v49 }
  0x89   :  { %1001 = vmatpush1.bf16.msra.mxu1 %v3244_v51 }
  0xda   :  { %v343_v52 = vpop.xlane.xlu0 %342 }
  0xdb   :  { %v353_v53 = vmul.f32 0.00390625, %v343_v52  ;;  %v349_v54 = vpop.xlane.xlu1 %348  ;;  %v3245_v52 = vld [vmem:[#allocation7 + $0x4e4] ss:$48 sps:$4 sm:$0xff]  }
  0xdc   :  { %v355_v55 = vmul.f32 0.00390625, %v349_v54  ;;  %v3249_v54 = vld [vmem:[#allocation7 + $0x4e0] ss:$48 sps:$4 sm:$0xff]   ;;  %635 = vmatprep.subr.bf16.mxu0 %v3245_v52 }
  0xdd   :  { %v3768_v56 = vsub.f32 %v3731_v0, %v353_v53  ;;  %v3771_v57 = vsub.f32 %v3733_v1, %v353_v53  ;;  %v3247_v53 = vld [vmem:[#allocation7 + $0x5ac] ss:$48 sps:$4 sm:$0xff]   ;;  %636 = vmatpush1.bf16.msra.mxu0 %v3249_v54 }
  0xde   :  { %v3774_v58 = vsub.f32 %v3735_v2, %v355_v55  ;;  %v3777_v59 = vsub.f32 %v3739_v4, %v355_v55  ;;  %v346_v60 = vpop.xlane.xlu0 %345  ;;  %v3250_v55 = vld [vmem:[#allocation7 + $0x5a8] ss:$48 sps:$4 sm:$0xff]   ;;  %1002 = vmatprep.subr.bf16.mxu1 %v3247_v53 }
  0xdf   :  { %v354_v61 = vmul.f32 0.00390625, %v346_v60  ;;  %v352_v62 = vpop.xlane.xlu1 %351  ;;  %v365_v63 = vmul.f32 %v3768_v56, %v3768_v56  ;;  %v366_v3 = vmul.f32 %v3771_v57, %v3771_v57  ;;  %v3251_v60 = vld [vmem:[#allocation7 + $0x544] ss:$48 sps:$4 sm:$0xff]   ;;  %1003 = vmatpush1.bf16.msra.mxu1 %v3250_v55 }
  0xe0   :  { %v356_v0 = vmul.f32 0.00390625, %v352_v62  ;;  %v369_v1 = vmul.f32 %v3774_v58, %v3774_v58  ;;  %v370_v2 = vmul.f32 %v3777_v59, %v3777_v59  ;;  %637 = vmatprep.subr.bf16.mxu0 %v3251_v60  ;;  %v3256_v62 = vld [vmem:[#allocation7 + $0x540] ss:$48 sps:$4 sm:$0xff]  }
  0xe1   :  { %v3788_v7 = vsub.f32 %v3741_v5, %v354_v61  ;;  %v3791_v4 = vsub.f32 %v3743_v6, %v354_v61  ;;  %v373_v11 = vadd.f32 %v366_v3, %v365_v63  ;;  %v3255_v61 = vld [vmem:[#allocation7 + $0x14] ss:$48 sps:$4 sm:$0xff]   ;;  %638 = vmatpush1.bf16.msra.mxu0 %v3256_v62  ;;  %v3262_v3 = vld [vmem:[#allocation7 + $0x5a0] ss:$48 sps:$4 sm:$0xff]  }
  0xe2   :  { %v3794_v15 = vsub.f32 %v3747_v8, %v356_v0  ;;  %v3797_v16 = vsub.f32 %v3749_v9, %v356_v0  ;;  %v284_v17 = vpop.xlane.xlu0 %283  ;;  %v379_v21 = vadd.f32 %v370_v2, %v369_v1  ;;  %3106 = vmatprep.subr.bf16.mxu1 %v3255_v61  ;;  %v3257_v63 = vld [vmem:[#allocation7 + $0x5a4] ss:$48 sps:$4 sm:$0xff]  }
  0xe3   :  { %v289_v18 = vmul.f32 0.00390625, %v284_v17  ;;  %374 = vadd.xlane.f32.xlu0 %v373_v11  ;;  %v287_v19 = vpop.xlane.xlu1 %286  ;;  %v367_v20 = vmul.f32 %v3788_v7, %v3788_v7  ;;  %v368_v5 = vmul.f32 %v3791_v4, %v3791_v4  ;;  %639 = vmatprep.subr.bf16.mxu0 %v3257_v63  ;;  %v315_v11 = vlaneseq }
  0xe4   :  { %v290_v6 = vmul.f32 0.00390625, %v287_v19  ;;  %v371_v22 = vmul.f32 %v3794_v15, %v3794_v15  ;;  %v372_v8 = vmul.f32 %v3797_v16, %v3797_v16 }
  0xe5   :  { %v3808_v9 = vsub.f32 %v3751_v10, %v289_v18  ;;  %v3811_v23 = vsub.f32 %v3755_v12, %v289_v18  ;;  %v376_v24 = vadd.f32 %v368_v5, %v367_v20  ;;  %640 = vmatpush1.bf16.msra.mxu0 %v3262_v3 }
  0xe6   :  { %v3814_v25 = vsub.f32 %v3757_v13, %v290_v6  ;;  %v3817_v26 = vsub.f32 %v3759_v14, %v290_v6  ;;  %v382_v27 = vadd.f32 %v372_v8, %v371_v22  ;;  %1025 = vmatprep.subr.bf16.mxu0 %v3255_v61  ;;  %v3827_v6 = vshrl.u32 %v315_v11, 7 }
  0xe7   :  { %377 = vadd.xlane.f32.xlu1 %v376_v24  ;;  %380 = vadd.xlane.f32.xlu0 %v379_v21  ;;  %v295_v28 = vmul.f32 %v3808_v9, %v3808_v9  ;;  %v296_v10 = vmul.f32 %v3811_v23, %v3811_v23 }
  0xe8   :  { %v297_v12 = vmul.f32 %v3814_v25, %v3814_v25  ;;  %v298_v29 = vmul.f32 %v3817_v26, %v3817_v26  ;;  %v423_v34 = vsub.s32 3, %v3827_v6  ;;  %v3840_v38 = vsub.s32 0, %v3827_v6 }
  0xe9   :  { %v299_v13 = vadd.f32 %v296_v10, %v295_v28  ;;  %v3850_v49 = vsub.s32 1, %v3827_v6 }
  0xea   :  { %v302_v14 = vadd.f32 %v298_v29, %v297_v12  ;;  %v407_v12 = vsub.s32 2, %v3827_v6 }
  0xeb   :  { %383 = vadd.xlane.f32.xlu1 %v382_v27  ;;  %300 = vadd.xlane.f32.xlu0 %v299_v13  ;;  %v3830_v13 = vld [vmem:[#allocation8 + $0x8] sm:$0xff] }
  0xec   :  { %v412_v33 = vrot.slane %v3830_v13, %v407_v12  ;;  %v428_v41 = vrot.slane %v3830_v13, %v423_v34  ;;  %v322_v48 = vrot.slane %v3830_v13, %v3840_v38  ;;  %v334_v11 = vrot.slane %v3830_v13, %v3850_v49 }
  0xef   :  { %303 = vadd.xlane.f32.xlu1 %v302_v14  ;;  %v3832_v14 = vld [vmem:[#allocation8] sm:$0xff] }
  0xf0   :  { %v408_v35 = vrot.slane %v3832_v14, %v407_v12  ;;  %v424_v43 = vrot.slane %v3832_v14, %v423_v34  ;;  %v318_v54 = vrot.slane %v3832_v14, %v3840_v38 }
 0x170   :  { %v375_v0 = vpop.xlane.xlu0 %374 }
 0x171   :  { %v385_v1 = vmul.f32 0.00390625, %v375_v0  ;;  %v3253_v0 = vld [vmem:[#allocation7 + $0x10] ss:$48 sps:$4 sm:$0xff]  }
 0x173   :  { %v389_v2 = vadd.f32 1e-05, %v385_v1 }
 0x174   :  { %v378_v17 = vpop.xlane.xlu1 %377  ;;  %v381_v18 = vpop.xlane.xlu0 %380 }
 0x175   :  { %3449 = vrsqrt.f32 %v389_v2  ;;  %v386_v19 = vmul.f32 0.00390625, %v378_v17  ;;  %v387_v20 = vmul.f32 0.00390625, %v381_v18 }
 0x177   :  { %v390_v5 = vadd.f32 1e-05, %v386_v19  ;;  %v391_v21 = vadd.f32 1e-05, %v387_v20  ;;  %v3261_v19 = vld [vmem:[#allocation7 + $0x74] ss:$48 sps:$4 sm:$0xff]  }
 0x178   :  { %v384_v22 = vpop.xlane.xlu1 %383  ;;  %v301_v8 = vpop.xlane.xlu0 %300 }
 0x179   :  { %3451 = vrsqrt.f32 %v390_v5  ;;  %v388_v24 = vmul.f32 0.00390625, %v384_v22  ;;  %v305_v27 = vmul.f32 0.00390625, %v301_v8  ;;  %v3259_v8 = vld [vmem:[#allocation7 + $0x70] ss:$48 sps:$4 sm:$0xff]  }
 0x17a   :  { %3453 = vrsqrt.f32 %v391_v21 }
 0x17b   :  { %v392_v28 = vadd.f32 1e-05, %v388_v24  ;;  %v307_v10 = vadd.f32 1e-05, %v305_v27 }
 0x17c   :  { %v304_v29 = vpop.xlane.xlu1 %303 }
 0x17d   :  { %3455 = vrsqrt.f32 %v392_v28  ;;  %v306_v30 = vmul.f32 0.00390625, %v304_v29  ;;  %v3265_v28 = vld [vmem:[#allocation7 + $0xd4] ss:$48 sps:$4 sm:$0xff]  }
 0x17e   :  { %3457 = vrsqrt.f32 %v307_v10 }
 0x17f   :  { %v3450_v31 = vpop.eup %3449  ;;  %v308_v32 = vadd.f32 1e-05, %v306_v30 }
 0x180   :  { %v398_v36 = vmul.f32 %v3450_v31, %v3771_v57  ;;  %v397_v37 = vmul.f32 %v3450_v31, %v3768_v56 }
 0x181   :  { %3459 = vrsqrt.f32 %v308_v32  ;;  %v3263_v32 = vld [vmem:[#allocation7 + $0xd0] ss:$48 sps:$4 sm:$0xff]  }
 0x182   :  { %v414_v40 = vmul.f32 %v412_v33, %v398_v36  ;;  %v413_v42 = vmul.f32 %v408_v35, %v397_v37  ;;  %v3266_v36 = vld [vmem:[#allocation7 + $0x130] ss:$48 sps:$4 sm:$0xff]   ;;  %v3271_v37 = vld [vmem:[#allocation7 + $0x194] ss:$48 sps:$4 sm:$0xff]  }
 0x183   :  { %v3452_v39 = vpop.eup %3451 }
 0x184   :  { %v3454_v44 = vpop.eup %3453  ;;  %v400_v45 = vmul.f32 %v3452_v39, %v3791_v4  ;;  %v399_v46 = vmul.f32 %v3452_v39, %v3788_v7  ;;  %v430_v51 = vadd.f32 %v428_v41, %v414_v40  ;;  %v429_v52 = vadd.f32 %v424_v43, %v413_v42  ;;  %v3269_v39 = vld [vmem:[#allocation7 + $0x190] ss:$48 sps:$4 sm:$0xff]   ;;  %v3274_v40 = vld [vmem:[#allocation7 + $0x1f4] ss:$48 sps:$4 sm:$0xff]  }
 0x185   :  { %v402_v57 = vmul.f32 %v3454_v44, %v3777_v59  ;;  %v401_v63 = vmul.f32 %v3454_v44, %v3774_v58  ;;  %v3277_v42 = vld [vmem:[#allocation7 + $0x254] ss:$48 sps:$4 sm:$0xff]  }
 0x186   :  { %v416_v47 = vmul.f32 %v412_v33, %v400_v45  ;;  %v415_v56 = vmul.f32 %v408_v35, %v399_v46  ;;  %v3280_v44 = vld [vmem:[#allocation7 + $0x2b4] ss:$48 sps:$4 sm:$0xff]   ;;  %v3278_v45 = vld [vmem:[#allocation7 + $0x2b0] ss:$48 sps:$4 sm:$0xff]  }
 0x187   :  { %v3456_v50 = vpop.eup %3455  ;;  %v418_v53 = vmul.f32 %v412_v33, %v402_v57  ;;  %v417_v21 = vmul.f32 %v408_v35, %v401_v63  ;;  %v3283_v46 = vld [vmem:[#allocation7 + $0x314] ss:$48 sps:$4 sm:$0xff]   ;;  %v3281_v57 = vld [vmem:[#allocation7 + $0x310] ss:$48 sps:$4 sm:$0xff]   ;;  %v1080_v63 = vsub.s32 5, %v3827_v6 }
 0x188   :  { %v3458_v4 = vpop.eup %3457  ;;  %v432_v55 = vadd.f32 %v428_v41, %v416_v47  ;;  %v431_v7 = vadd.f32 %v424_v43, %v415_v56  ;;  %v404_v59 = vmul.f32 %v3456_v50, %v3797_v16  ;;  %v403_v60 = vmul.f32 %v3456_v50, %v3794_v15  ;;  %v3286_v47 = vld [vmem:[#allocation7 + $0x374] ss:$48 sps:$4 sm:$0xff]   ;;  %v3284_v56 = vld [vmem:[#allocation7 + $0x370] ss:$48 sps:$4 sm:$0xff]  }
 0x189   :  { %v312_v61 = vmul.f32 %v3458_v4, %v3811_v23  ;;  %v311_v62 = vmul.f32 %v3458_v4, %v3808_v9  ;;  %v434_v18 = vadd.f32 %v428_v41, %v418_v53  ;;  %v330_v15 = vrot.slane %v3832_v14, %v3850_v49  ;;  %v3287_v50 = vld [vmem:[#allocation7 + $0x3d0] ss:$48 sps:$4 sm:$0xff]   ;;  %v3295_v53 = vld [vmem:[#allocation7 + $0x494] ss:$48 sps:$4 sm:$0xff]  }
 0x18a   :  { %v438_v3 = vpack.c.bf16 %v432_v55, %v430_v51  ;;  %v3859_v1 = vpack.c.bf16 %v431_v7, %v429_v52  ;;  %v420_v2 = vmul.f32 %v412_v33, %v404_v59  ;;  %v419_v23 = vmul.f32 %v408_v35, %v403_v60  ;;  %v3268_v35 = vld [vmem:[#allocation7 + $0x134] ss:$48 sps:$4 sm:$0xff]   ;;  %v3290_v52 = vld [vmem:[#allocation7 + $0x430] ss:$48 sps:$4 sm:$0xff]  }
 0x18b   :  { %v3460_v17 = vpop.eup %3459  ;;  %v324_v16 = vmul.f32 %v322_v48, %v312_v61  ;;  %v323_v5 = vmul.f32 %v318_v54, %v311_v62  ;;  %v3292_v51 = vld [vmem:[#allocation7 + $0x434] ss:$48 sps:$4 sm:$0xff]   ;;  %v3296_v55 = vld [vmem:[#allocation7 + $0x4f0] ss:$48 sps:$4 sm:$0xff]   ;;  %v3637_v62 = vmov 0.0  }
 0x18c   :  { %1004 = vmatprep.mubr.bf16.mxu1 %v438_v3  ;;  %v436_v9 = vadd.f32 %v428_v41, %v420_v2  ;;  %v314_v58 = vmul.f32 %v3460_v17, %v3817_v26  ;;  %v313_v20 = vmul.f32 %v3460_v17, %v3814_v25  ;;  %v435_v10 = vadd.f32 %v424_v43, %v419_v23  ;;  %v3272_v41 = vld [vmem:[#allocation7 + $0x1f0] ss:$48 sps:$4 sm:$0xff]   ;;  %v3298_v4 = vld [vmem:[#allocation7 + $0x4f4] ss:$48 sps:$4 sm:$0xff]  }
 0x18d   :  { %1005 = vmatmul.mubr.bf16.vlgmr.msra.gmra.mrb[0].mxu1 %v3859_v1  ;;  %v336_v12 = vadd.f32 %v334_v11, %v324_v16  ;;  %v335_v30 = vadd.f32 %v330_v15, %v323_v5  ;;  %v433_v26 = vadd.f32 %v424_v43, %v417_v21  ;;  %v3275_v43 = vld [vmem:[#allocation7 + $0x250] ss:$48 sps:$4 sm:$0xff]   ;;  %v3301_v7 = vld [vmem:[#allocation7 + $0x554] ss:$48 sps:$4 sm:$0xff]   ;;  %v1085_v2 = vrot.slane %v3830_v13, %v1080_v63 }
 0x18e   :  { %3122 = vmatpush1.bf16.msra.mxu1 %v3253_v0  ;;  %v440_v22 = vpack.c.bf16 %v436_v9, %v434_v18  ;;  %v326_v24 = vmul.f32 %v322_v48, %v314_v58  ;;  %v325_v27 = vmul.f32 %v318_v54, %v313_v20  ;;  %v3289_v48 = vld [vmem:[#allocation7 + $0x3d4] ss:$48 sps:$4 sm:$0xff]   ;;  %v3293_v54 = vld [vmem:[#allocation7 + $0x490] ss:$48 sps:$4 sm:$0xff]  }
 0x18f   :  { %3107 = vmatprep.subr.bf16.mxu1 %v3261_v19  ;;  %v3868_v34 = vpack.c.bf16 %v435_v10, %v433_v26  ;;  %v3299_v59 = vld [vmem:[#allocation7 + $0x550] ss:$48 sps:$4 sm:$0xff]   ;;  %v3304_v60 = vld [vmem:[#allocation7 + $0x5b4] ss:$48 sps:$4 sm:$0xff]  }
 0x190   :  { %1014 = vmatprep.mubr.bf16.mxu1 %v440_v22  ;;  %v338_v29 = vadd.f32 %v334_v11, %v326_v24  ;;  %v337_v31 = vadd.f32 %v330_v15, %v325_v27  ;;  %v3302_v61 = vld [vmem:[#allocation7 + $0x5b0] ss:$48 sps:$4 sm:$0xff]   ;;  %v443_v11 = vsub.s32 4, %v3827_v6 }
 0x192   :  { %3123 = vmatpush1.bf16.msra.mxu1 %v3259_v8  ;;  %v340_v25 = vpack.c.bf16 %v338_v29, %v336_v12  ;;  %v339_v33 = vpack.c.bf16 %v337_v31, %v335_v30  ;;  %v444_v58 = vrot.slane %v3832_v14, %v443_v11  ;;  %v448_v5 = vrot.slane %v3830_v13, %v443_v11 }
 0x193   :  { %3108 = vmatprep.subr.bf16.mxu1 %v3265_v28 }
 0x194   :  { %641 = vmatprep.mubr.bf16.mxu0 %v340_v25 }
 0x195   :  { %642 = vmatmul.mubr.bf16.vlgmr.msra.gmra.mrb[0].mxu0 %v339_v33  ;;  %1015 = vmatmul.mubr.bf16.gmra.mrb[4].mxu1 %v3868_v34 }
 0x196   :  { %1026 = vmatpush1.bf16.msra.mxu0 %v3253_v0  ;;  %3124 = vmatpush1.bf16.msra.mxu1 %v3263_v32 }
 0x197   :  { %1057 = vmatprep.mubr.bf16.mxu0 %v438_v3  ;;  %1067 = vmatprep.mubr.bf16.mxu1 %v440_v22  ;;  %v1081_v3 = vrot.slane %v3832_v14, %v1080_v63 }
 0x198   :  { %1027 = vmatprep.subr.bf16.mxu0 %v3261_v19  ;;  %3109 = vmatprep.subr.bf16.mxu1 %v3268_v35 }
 0x19a   :  { %1028 = vmatpush1.bf16.msra.mxu0 %v3259_v8  ;;  %3125 = vmatpush1.bf16.msra.mxu1 %v3266_v36 }
 0x19b   :  { %1029 = vmatprep.subr.bf16.mxu0 %v3265_v28  ;;  %3110 = vmatprep.subr.bf16.mxu1 %v3271_v37 }
 0x19e   :  { %1030 = vmatpush1.bf16.msra.mxu0 %v3263_v32  ;;  %3126 = vmatpush1.bf16.msra.mxu1 %v3269_v39 }
 0x19f   :  { %1031 = vmatprep.subr.bf16.mxu0 %v3268_v35  ;;  %3111 = vmatprep.subr.bf16.mxu1 %v3274_v40 }
 0x1a2   :  { %1032 = vmatpush1.bf16.msra.mxu0 %v3266_v36  ;;  %3127 = vmatpush1.bf16.msra.mxu1 %v3272_v41 }
 0x1a3   :  { %1033 = vmatprep.subr.bf16.mxu0 %v3271_v37  ;;  %3112 = vmatprep.subr.bf16.mxu1 %v3277_v42 }
 0x1a6   :  { %1034 = vmatpush1.bf16.msra.mxu0 %v3269_v39  ;;  %3128 = vmatpush1.bf16.msra.mxu1 %v3275_v43 }
 0x1a7   :  { %1035 = vmatprep.subr.bf16.mxu0 %v3274_v40  ;;  %3113 = vmatprep.subr.bf16.mxu1 %v3280_v44 }
 0x1aa   :  { %1036 = vmatpush1.bf16.msra.mxu0 %v3272_v41  ;;  %3129 = vmatpush1.bf16.msra.mxu1 %v3278_v45 }
 0x1ab   :  { %1037 = vmatprep.subr.bf16.mxu0 %v3277_v42  ;;  %3114 = vmatprep.subr.bf16.mxu1 %v3283_v46 }
 0x1ae   :  { %1038 = vmatpush1.bf16.msra.mxu0 %v3275_v43  ;;  %3130 = vmatpush1.bf16.msra.mxu1 %v3281_v57 }
 0x1af   :  { %1039 = vmatprep.subr.bf16.mxu0 %v3280_v44  ;;  %3115 = vmatprep.subr.bf16.mxu1 %v3286_v47  ;;  %v1096_v44 = vsub.s32 6, %v3827_v6 }
 0x1b2   :  { %1040 = vmatpush1.bf16.msra.mxu0 %v3278_v45  ;;  %3131 = vmatpush1.bf16.msra.mxu1 %v3284_v56  ;;  %v1097_v45 = vrot.slane %v3832_v14, %v1096_v44 }
 0x1b3   :  { %1041 = vmatprep.subr.bf16.mxu0 %v3283_v46  ;;  %3116 = vmatprep.subr.bf16.mxu1 %v3289_v48  ;;  %v1101_v46 = vrot.slane %v3830_v13, %v1096_v44 }
 0x1b6   :  { %1042 = vmatpush1.bf16.msra.mxu0 %v3281_v57  ;;  %3132 = vmatpush1.bf16.msra.mxu1 %v3287_v50 }
 0x1b7   :  { %1043 = vmatprep.subr.bf16.mxu0 %v3286_v47  ;;  %3117 = vmatprep.subr.bf16.mxu1 %v3292_v51 }
 0x1ba   :  { %1044 = vmatpush1.bf16.msra.mxu0 %v3284_v56  ;;  %3133 = vmatpush1.bf16.msra.mxu1 %v3290_v52 }
 0x1bb   :  { %1045 = vmatprep.subr.bf16.mxu0 %v3289_v48  ;;  %3118 = vmatprep.subr.bf16.mxu1 %v3295_v53 }
 0x1be   :  { %1046 = vmatpush1.bf16.msra.mxu0 %v3287_v50  ;;  %3134 = vmatpush1.bf16.msra.mxu1 %v3293_v54 }
 0x1bf   :  { %1047 = vmatprep.subr.bf16.mxu0 %v3292_v51  ;;  %3119 = vmatprep.subr.bf16.mxu1 %v3298_v4 }
 0x1c2   :  { %1048 = vmatpush1.bf16.msra.mxu0 %v3290_v52  ;;  %3135 = vmatpush1.bf16.msra.mxu1 %v3296_v55 }
 0x1c3   :  { %1049 = vmatprep.subr.bf16.mxu0 %v3295_v53  ;;  %3120 = vmatprep.subr.bf16.mxu1 %v3301_v7 }
 0x1c6   :  { %1050 = vmatpush1.bf16.msra.mxu0 %v3293_v54  ;;  %3136 = vmatpush1.bf16.msra.mxu1 %v3299_v59 }
 0x1c7   :  { %1051 = vmatprep.subr.bf16.mxu0 %v3298_v4  ;;  %3121 = vmatprep.subr.bf16.mxu1 %v3304_v60 }
 0x1ca   :  { %1052 = vmatpush1.bf16.msra.mxu0 %v3296_v55  ;;  %3137 = vmatpush1.bf16.msra.mxu1 %v3302_v61 }
 0x1cb   :  { %1053 = vmatprep.subr.bf16.mxu0 %v3301_v7  ;;  %3010 = vmatprep.subr.bf16.mxu1 %v3637_v62 }
 0x1cd   :  { %1068 = vmatmul.mubr.bf16.vlgmr.msra.gmra.mrb[8].mxu1 %v3868_v34 }
 0x1ce   :  { %1054 = vmatpush1.bf16.msra.mxu0 %v3299_v59  ;;  %3012 = vmatprep.mubr.msk.bf16.mxu1 %vm3638_vm0, %v3637_v62 }
 0x1cf   :  { %1055 = vmatprep.subr.bf16.mxu0 %v3304_v60 }
 0x1d2   :  { %1056 = vmatpush1.bf16.msra.mxu0 %v3302_v61 }
 0x1d3   :  { %3058 = vmatprep.subr.bf16.mxu0 %v3637_v62 }
 0x1d5   :  { %1058 = vmatmul.mubr.bf16.vlgmr.msra.gmra.mrb[4].mxu0 %v3859_v1 }
 0x1d6   :  { %3060 = vmatprep.mubr.msk.bf16.mxu0 %vm3638_vm0, %v3637_v62 }
 0x260   :  { %v1006_v0 = vpop.f32.mrb[0].mxu1 }
 0x261   :  { %v1008_v1 = vpop.f32.mrb[1].mxu1  ;;  %v1086_v18 = vadd.f32 %v1081_v3, %v1006_v0 }
 0x262   :  { %v1010_v17 = vpop.f32.mrb[2].mxu1  ;;  %v1087_v15 = vadd.f32 %v1085_v2, %v1008_v1 }
 0x263   :  { %v1088_v19 = vadd.f32 %v1081_v3, %v1010_v17  ;;  %v1012_v16 = vpop.f32.mrb[3].mxu1 }
 0x264   :  { %v1089_v23 = vadd.f32 %v1085_v2, %v1012_v16 }
 0x265   :  { %v3883_v9 = vpack.c.bf16 %v1088_v19, %v1086_v18 }
 0x266   :  { %v3886_v20 = vpack.c.bf16 %v1089_v23, %v1087_v15 }
 0x267   :  { %v1121_v21 = vsel %vm1116_vm1, %v3883_v9, 0 }
 0x268   :  { %v643_v22 = vpop.f32.mrb[0].mxu0  ;;  %v1016_v8 = vpop.f32.mrb[4].mxu1  ;;  %3011 = vmatpush3.bf16.xpose.msra.mxu1 %v1121_v21  ;;  %v1556_v24 = vsel %vm1116_vm1, %v3886_v20, 0 }
 0x269   :  { %v644_v27 = vadd.f32 %v643_v22, %v444_v58  ;;  %v645_v28 = vpop.f32.mrb[1].mxu0  ;;  %v1018_v10 = vpop.f32.mrb[5].mxu1  ;;  %3059 = vmatpush3.bf16.xpose.msra.mxu0 %v1556_v24  ;;  %3016 = vmatprep.subr.bf16.mxu1 %v3637_v62  ;;  %v1090_v26 = vadd.f32 %v1081_v3, %v1016_v8 }
 0x26a   :  { %v646_v12 = vadd.f32 %v645_v28, %v448_v5  ;;  %v1091_v29 = vadd.f32 %v1085_v2, %v1018_v10  ;;  %v647_v30 = vpop.f32.mrb[2].mxu0  ;;  %v1020_v31 = vpop.f32.mrb[6].mxu1  ;;  %3070 = vmatprep.subr.bf16.mxu0 %v3637_v62 }
 0x26b   :  { %v1092_v25 = vadd.f32 %v1081_v3, %v1020_v31  ;;  %v649_v32 = vpop.f32.mrb[3].mxu0  ;;  %v1022_v33 = vpop.f32.mrb[7].mxu1  ;;  %v3897_v36 = vpack.c.bf16 %v644_v27, %v644_v27  ;;  %v648_v42 = vadd.f32 %v647_v30, %v444_v58 }
 0x26c   :  { %v3895_v34 = vadd.f32 %v649_v32, %v448_v5  ;;  %v1093_v35 = vadd.f32 %v1085_v2, %v1022_v33  ;;  %v3901_v39 = vpack.c.bf16 %v646_v12, %v646_v12 }
 0x26d   :  { %v3899_v37 = vpack.c.bf16 %v1092_v25, %v1090_v26  ;;  %v3916_v43 = vpack.c.bf16 %v648_v42, %v648_v42 }
 0x26e   :  { %v3903_v40 = vpack.c.bf16 %v1093_v35, %v1091_v29 }
 0x26f   :  { %3013 = vmatmul.mubr.msk.bf16.vlgmr.msra.gmra.mrb[12].mxu1 %vm1116_vm1, %v3897_v36  ;;  %v1167_v41 = vsel %vm1116_vm1, %v3899_v37, 0 }
 0x270   :  { %3017 = vmatpush3.bf16.xpose.msra.mxu1 %v1167_v41  ;;  %3061 = vmatmul.mubr.msk.bf16.vlgmr.msra.gmra.mrb[8].mxu0 %vm1116_vm1, %v3901_v39 }
 0x271   :  { %3018 = vmatprep.mubr.msk.bf16.mxu1 %vm3638_vm0, %v3637_v62  ;;  %3022 = vmatprep.subr.bf16.mxu1 %v3637_v62 }
 0x272   :  { %3072 = vmatprep.mubr.msk.bf16.mxu0 %vm3638_vm0, %v3637_v62 }
 0x277   :  { %3019 = vmatmul.mubr.msk.bf16.vlgmr.msra.gmra.mrb[16].mxu1 %vm1116_vm1, %v3916_v43 }
 0x278   :  { %3024 = vmatprep.mubr.msk.bf16.mxu1 %vm3638_vm0, %v3637_v62 }
 0x2a0   :  { %v1069_v57 = vpop.f32.mrb[8].mxu1 }
 0x2a1   :  { %v1106_v47 = vadd.f32 %v1097_v45, %v1069_v57  ;;  %v1071_v56 = vpop.f32.mrb[9].mxu1 }
 0x2a2   :  { %v1107_v48 = vadd.f32 %v1101_v46, %v1071_v56  ;;  %v1073_v50 = vpop.f32.mrb[10].mxu1 }
 0x2a3   :  { %v1108_v51 = vadd.f32 %v1097_v45, %v1073_v50  ;;  %v1075_v52 = vpop.f32.mrb[11].mxu1 }
 0x2a4   :  { %v1109_v53 = vadd.f32 %v1101_v46, %v1075_v52 }
 0x2a5   :  { %v3925_v54 = vpack.c.bf16 %v1108_v51, %v1106_v47 }
 0x2a6   :  { %v3927_v4 = vpack.c.bf16 %v1109_v53, %v1107_v48 }
 0x2a8   :  { %v1059_v55 = vpop.f32.mrb[4].mxu0 }
 0x2a9   :  { %v1061_v7 = vpop.f32.mrb[5].mxu0  ;;  %v1102_v60 = vadd.f32 %v1097_v45, %v1059_v55 }
 0x2aa   :  { %v1063_v59 = vpop.f32.mrb[6].mxu0  ;;  %v1103_v63 = vadd.f32 %v1101_v46, %v1061_v7 }
 0x2ab   :  { %v1104_v61 = vadd.f32 %v1097_v45, %v1063_v59  ;;  %v1065_v14 = vpop.f32.mrb[7].mxu0 }
 0x2ac   :  { %v1105_v13 = vadd.f32 %v1101_v46, %v1065_v14 }
 0x2ad   :  { %v3929_v3 = vpack.c.bf16 %v1104_v61, %v1102_v60 }
 0x2ae   :  { %v3931_v0 = vpack.c.bf16 %v1105_v13, %v1103_v63 }
 0x2af   :  { %3023 = vmatpush3.bf16.msra.mxu1 %v3929_v3 }
 0x2b0   :  { %3071 = vmatpush3.bf16.msra.mxu0 %v3931_v0  ;;  %3028 = vmatprep.subr.bf16.mxu1 %v3637_v62 }
 0x2b1   :  { %3082 = vmatprep.subr.bf16.mxu0 %v3637_v62 }
 0x342   :  { %v1157_v2 = vpop.f32.mrb[12].mxu1 }
 0x343   :  { %v1209_v1 = vmul.f32 0.125, %v1157_v2  ;;  %v3014_v11 = vpop.f32.mrb[13].mxu1  ;;  %v3937_v17 = vpop.f32.mrb[8].mxu0 }
 0x344   :  { %v1160_v18 = vpop.f32.mrb[14].mxu1  ;;  %v3062_v19 = vpop.f32.mrb[9].mxu0 }
 0x345   :  { %v3015_v16 = vpop.f32.mrb[15].mxu1  ;;  %v1595_v15 = vpop.f32.mrb[10].mxu0  ;;  %v1212_v23 = vsel %vm1211_vm2, %v1209_v1, -inf }
 0x346   :  { %v3063_v58 = vpop.f32.mrb[11].mxu0  ;;  %1213 = vmax.xlane.f32.xlu0 %v1212_v23 }
 0x347   :  { %v1644_v58 = vmul.f32 0.125, %v3937_v17 }
 0x34a   :  { %v1203_v5 = vpop.f32.mrb[16].mxu1 }
 0x34b   :  { %v1210_v21 = vmul.f32 0.125, %v1203_v5  ;;  %v3020_v22 = vpop.f32.mrb[17].mxu1  ;;  %v1646_v5 = vsel %vm1211_vm2, %v1644_v58, -inf }
 0x34c   :  { %v1206_v8 = vpop.f32.mrb[18].mxu1 }
 0x34d   :  { %v3021_v24 = vpop.f32.mrb[19].mxu1  ;;  %v1215_v27 = vsel %vm1211_vm2, %v1210_v21, -inf }
 0x34e   :  { %1216 = vmax.xlane.f32.xlu1 %v1215_v27 }
 0x3d3   :  { %v1214_v28 = vpop.xlane.xlu0 %1213 }
 0x3d4   :  { %v1218_v10 = vsub.f32 %v1209_v1, %v1214_v28 }
 0x3d6   :  { %v1220_v12 = vmul.f32 1.442695, %v1218_v10 }
 0x3d8   :  { %3461 = vpow2.f32 %v1220_v12 }
 0x3db   :  { %v1217_v29 = vpop.xlane.xlu1 %1216 }
 0x3dc   :  { %v1219_v30 = vsub.f32 %v1210_v21, %v1217_v29 }
 0x3de   :  { %v1222_v31 = vmul.f32 1.442695, %v1219_v30 }
 0x3e0   :  { %3463 = vpow2.f32 %v1222_v31 }
 0x3e2   :  { %v3462_v26 = vpop.eup %3461 }
 0x3e3   :  { %v1224_v25 = vsel %vm1211_vm2, %v3462_v26, 0.0 }
 0x3e4   :  { %1225 = vadd.xlane.f32.xlu0 %v1224_v25 }
 0x3ea   :  { %v3464_v32 = vpop.eup %3463 }
 0x3eb   :  { %v1227_v33 = vsel %vm1211_vm2, %v3464_v32, 0.0 }
 0x3ec   :  { %1228 = vadd.xlane.f32.xlu1 %v1227_v33 }
 0x3fa   :  { %1326 = vrot.lane.b32.xlu0 %v3883_v9, %s3639_s3 }
 0x3fd   :  { %1323 = vrot.lane.b32.xlu1 %v3897_v36, %s3639_s3 }
 0x401   :  { %1378 = vrot.lane.b32.xlu1 %v3899_v37, %s3639_s3 }
 0x405   :  { %1375 = vrot.lane.b32.xlu1 %v3916_v43, %s3639_s3 }
 0x471   :  { %v1226_v35 = vpop.xlane.xlu0 %1225 }
 0x472   :  { %3465 = vrcp.f32 %v1226_v35 }
 0x475   :  { %v1327_v37 = vpop.permute.xlu0 %1326 }
 0x476   :  { %v1332_v57 = vsel %vm1116_vm1, %v1327_v37, 0 }
 0x479   :  { %v1229_v41 = vpop.xlane.xlu1 %1228 }
 0x47a   :  { %3467 = vrcp.f32 %v1229_v41 }
 0x47c   :  { %v3466_v42 = vpop.eup %3465 }
 0x47d   :  { %v1232_v44 = vmul.f32 %v3466_v42, %v3462_v26  ;;  %v1324_v46 = vpop.permute.xlu1 %1323  ;;  %v1602_v42 = vsel %vm1116_vm1, %v3903_v40, 0 }
 0x47f   :  { %v1234_v45 = vpack.c.bf16 %v1232_v44, %v1232_v44  ;;  %v1547_v44 = vpack.c.bf16 %v3895_v34, %v3895_v34 }
 0x481   :  { %3025 = vmatmul.mubr.msk.bf16.vlgmr.msra.gmra.mrb[20].mxu1 %vm1211_vm2, %v1234_v45  ;;  %v1379_v47 = vpop.permute.xlu1 %1378 }
 0x482   :  { %3029 = vmatpush3.bf16.msra.mxu1 %v3925_v54  ;;  %3030 = vmatprep.mubr.msk.bf16.mxu1 %vm3638_vm0, %v3637_v62  ;;  %v1384_v56 = vsel %vm1116_vm1, %v1379_v47, 0 }
 0x483   :  { %3034 = vmatprep.subr.bf16.mxu1 %v3637_v62 }
 0x484   :  { %v3468_v9 = vpop.eup %3467 }
 0x485   :  { %v1233_v36 = vmul.f32 %v3468_v9, %v3464_v32  ;;  %v1376_v48 = vpop.permute.xlu1 %1375 }
 0x487   :  { %v1235_v43 = vpack.c.bf16 %v1233_v36, %v1233_v36 }
 0x489   :  { %3031 = vmatmul.mubr.msk.bf16.vlgmr.msra.gmra.mrb[24].mxu1 %vm1211_vm2, %v1235_v43 }
 0x48a   :  { %3036 = vmatprep.mubr.msk.bf16.mxu1 %vm3638_vm0, %v3637_v62 }
 0x48b   :  { %3035 = vmatpush3.bf16.xpose.msra.mxu1 %v1332_v57 }
 0x48c   :  { %3040 = vmatprep.subr.bf16.mxu1 %v3637_v62 }
 0x492   :  { %3037 = vmatmul.mubr.msk.bf16.vlgmr.msra.gmra.mrb[28].mxu1 %vm1116_vm1, %v1324_v46 }
 0x493   :  { %3041 = vmatpush3.bf16.xpose.msra.mxu1 %v1384_v56  ;;  %3042 = vmatprep.mubr.msk.bf16.mxu1 %vm3638_vm0, %v3637_v62 }
 0x494   :  { %3046 = vmatprep.subr.bf16.mxu1 %v3637_v62 }
 0x49a   :  { %3043 = vmatmul.mubr.msk.bf16.vlgmr.msra.gmra.mrb[32].mxu1 %vm1116_vm1, %v1376_v48 }
 0x49b   :  { %3048 = vmatprep.mubr.msk.bf16.mxu1 %vm3638_vm0, %v3637_v62 }
 0x554   :  { %v3969_v50 = vpop.f32.mrb[20].mxu1 }
 0x555   :  { %v3026_v51 = vpop.f32.mrb[21].mxu1 }
 0x556   :  { %v1276_v52 = vpop.f32.mrb[22].mxu1 }
 0x557   :  { %v3027_v53 = vpop.f32.mrb[23].mxu1 }
 0x55c   :  { %v3971_v55 = vpop.f32.mrb[24].mxu1 }
 0x55d   :  { %v3032_v7 = vpop.f32.mrb[25].mxu1 }
 0x55e   :  { %v1319_v59 = vpop.f32.mrb[26].mxu1 }
 0x55f   :  { %v3033_v60 = vpop.f32.mrb[27].mxu1 }
 0x565   :  { %v1368_v61 = vpop.f32.mrb[28].mxu1 }
 0x566   :  { %v1426_v14 = vmul.f32 0.125, %v1368_v61  ;;  %v3038_v63 = vpop.f32.mrb[29].mxu1 }
 0x567   :  { %v1371_v13 = vpop.f32.mrb[30].mxu1 }
 0x568   :  { %v3039_v2 = vpop.f32.mrb[31].mxu1  ;;  %v1428_v1 = vsel %vm1211_vm2, %v1426_v14, -inf }
 0x569   :  { %1429 = vmax.xlane.f32.xlu0 %v1428_v1 }
 0x56d   :  { %v1420_v11 = vpop.f32.mrb[32].mxu1 }
 0x56e   :  { %v1427_v18 = vmul.f32 0.125, %v1420_v11  ;;  %v3044_v19 = vpop.f32.mrb[33].mxu1 }
 0x56f   :  { %v1423_v16 = vpop.f32.mrb[34].mxu1 }
 0x570   :  { %v3045_v15 = vpop.f32.mrb[35].mxu1  ;;  %v1431_v23 = vsel %vm1211_vm2, %v1427_v18, -inf }
 0x571   :  { %1432 = vmax.xlane.f32.xlu1 %v1431_v23 }
 0x582   :  { %1500 = vrot.lane.b32.xlu1 %v3925_v54, %s3639_s3 }
 0x5a6   :  { %1647 = vmax.xlane.f32.xlu1 %v1646_v5 }
 0x5b7   :  { %1812 = vrot.lane.b32.xlu1 %v3903_v40, %s3639_s3 }
 0x5f6   :  { %v1430_v21 = vpop.xlane.xlu0 %1429 }
 0x5f7   :  { %v1434_v22 = vsub.f32 %v1426_v14, %v1430_v21 }
 0x5f9   :  { %v1436_v8 = vmul.f32 1.442695, %v1434_v22 }
 0x5fb   :  { %3469 = vpow2.f32 %v1436_v8 }
 0x5fe   :  { %v1433_v24 = vpop.xlane.xlu1 %1432 }
 0x5ff   :  { %v1435_v27 = vsub.f32 %v1427_v18, %v1433_v24 }
 0x601   :  { %v1438_v28 = vmul.f32 1.442695, %v1435_v27 }
 0x602   :  { %v1501_v33 = vpop.permute.xlu1 %1500 }
 0x603   :  { %3471 = vpow2.f32 %v1438_v28 }
 0x605   :  { %v3470_v10 = vpop.eup %3469 }
 0x606   :  { %v1440_v12 = vsel %vm1211_vm2, %v3470_v10, 0.0 }
 0x607   :  { %1441 = vadd.xlane.f32.xlu0 %v1440_v12 }
 0x60d   :  { %v3472_v54 = vpop.eup %3471 }
 0x60e   :  { %v1443_v17 = vsel %vm1211_vm2, %v3472_v54, 0.0 }
 0x60f   :  { %1444 = vadd.xlane.f32.xlu0 %v1443_v17 }
 0x625   :  { %1453 = vrot.lane.b32.xlu0 %v3929_v3, %s3639_s3 }
 0x633   :  { %v1648_v45 = vpop.xlane.xlu1 %1647 }
 0x634   :  { %v1652_v37 = vsub.f32 %v1644_v58, %v1648_v45 }
 0x636   :  { %v1654_v46 = vmul.f32 1.442695, %v1652_v37 }
 0x694   :  { %v1442_v29 = vpop.xlane.xlu0 %1441 }
 0x695   :  { %3473 = vrcp.f32 %v1442_v29 }
 0x69c   :  { %v1445_v30 = vpop.xlane.xlu0 %1444 }
 0x69d   :  { %3475 = vrcp.f32 %v1445_v30 }
 0x69e   :  { %3477 = vpow2.f32 %v1654_v46 }
 0x69f   :  { %v3474_v31 = vpop.eup %3473 }
 0x6a0   :  { %v1448_v26 = vmul.f32 %v3474_v31, %v3470_v10  ;;  %v1454_v25 = vpop.permute.xlu0 %1453 }
 0x6a1   :  { %3047 = vmatpush3.bf16.msra.mxu1 %v1454_v25 }
 0x6a2   :  { %v1450_v32 = vpack.c.bf16 %v1448_v26, %v1448_v26  ;;  %3052 = vmatprep.subr.bf16.mxu1 %v3637_v62 }
 0x6a4   :  { %3049 = vmatmul.mubr.msk.bf16.vlgmr.msra.gmra.mrb[36].mxu1 %vm1211_vm2, %v1450_v32 }
 0x6a5   :  { %3053 = vmatpush3.bf16.msra.mxu1 %v1501_v33  ;;  %3054 = vmatprep.mubr.msk.bf16.mxu1 %vm3638_vm0, %v3637_v62 }
 0x6a6   :  { %3064 = vmatprep.subr.bf16.mxu1 %v3637_v62 }
 0x6a7   :  { %v3476_v3 = vpop.eup %3475 }
 0x6a8   :  { %v1449_v35 = vmul.f32 %v3476_v3, %v3472_v54  ;;  %v3478_v61 = vpop.eup %3477 }
 0x6a9   :  { %v1658_v14 = vsel %vm1211_vm2, %v3478_v61, 0.0 }
 0x6aa   :  { %v1451_v41 = vpack.c.bf16 %v1449_v35, %v1449_v35 }
 0x6ac   :  { %3055 = vmatmul.mubr.msk.bf16.vlgmr.msra.gmra.mrb[40].mxu1 %vm1211_vm2, %v1451_v41 }
 0x6ad   :  { %3066 = vmatprep.mubr.msk.bf16.mxu1 %vm3638_vm0, %v3637_v62 }
 0x6ae   :  { %3065 = vmatpush3.bf16.xpose.msra.mxu1 %v1602_v42 }
 0x6af   :  { %3076 = vmatprep.subr.bf16.mxu1 %v3637_v62 }
 0x6b5   :  { %3067 = vmatmul.mubr.msk.bf16.vlgmr.msra.gmra.mrb[44].mxu1 %vm1116_vm1, %v1547_v44 }
 0x6b6   :  { %3077 = vmatpush3.bf16.msra.mxu1 %v3927_v4  ;;  %3078 = vmatprep.mubr.msk.bf16.mxu1 %vm3638_vm0, %v3637_v62 }
 0x6b7   :  { %3088 = vmatprep.subr.bf16.mxu1 %v3637_v62 }
 0x777   :  { %v4003_v40 = vpop.f32.mrb[36].mxu1 }
 0x778   :  { %v3050_v9 = vpop.f32.mrb[37].mxu1 }
 0x779   :  { %v1496_v36 = vpop.f32.mrb[38].mxu1 }
 0x77a   :  { %v3051_v43 = vpop.f32.mrb[39].mxu1 }
 0x77f   :  { %v4005_v57 = vpop.f32.mrb[40].mxu1 }
 0x780   :  { %v3156_v34 = vpack.i.bf16 %v4005_v57, %v4003_v40  ;;  %v3056_v47 = vpop.f32.mrb[41].mxu1  ;;  %v3374_v40 = vld [vmem:[#allocation7 + $0x2c0] ss:$48 sps:$4 sm:$0xff]   ;;  %v3379_v57 = vld [vmem:[#allocation7 + $0x324] ss:$48 sps:$4 sm:$0xff]  }
 0x781   :  { %v1543_v56 = vpop.f32.mrb[42].mxu1 }
 0x782   :  { %v3057_v48 = vpop.f32.mrb[43].mxu1 }
 0x788   :  { %v1638_v51 = vpop.f32.mrb[44].mxu1 }
 0x789   :  { %v1645_v52 = vmul.f32 0.125, %v1638_v51  ;;  %v3068_v53 = vpop.f32.mrb[45].mxu1 }
 0x78a   :  { %v1641_v7 = vpop.f32.mrb[46].mxu1 }
 0x78b   :  { %v3069_v59 = vpop.f32.mrb[47].mxu1  ;;  %v1649_v60 = vsel %vm1211_vm2, %v1645_v52, -inf }
 0x78c   :  { %1650 = vmax.xlane.f32.xlu0 %v1649_v60 }
 0x790   :  { %1659 = vadd.xlane.f32.xlu0 %v1658_v14 }
 0x7a6   :  { %1760 = vrot.lane.b32.xlu0 %v3886_v20, %s3639_s3  ;;  %v1813_v20 = vpop.permute.xlu1 %1812 }
 0x7a7   :  { %v1818_v27 = vsel %vm1116_vm1, %v1813_v20, 0  ;;  %v3319_v20 = vld [vmem:[#allocation7 + $0x19c] ss:$48 sps:$4 sm:$0xff]  }
 0x819   :  { %v1651_v63 = vpop.xlane.xlu0 %1650 }
 0x81a   :  { %v1653_v13 = vsub.f32 %v1645_v52, %v1651_v63 }
 0x81c   :  { %v1656_v2 = vmul.f32 1.442695, %v1653_v13 }
 0x81d   :  { %v1660_v1 = vpop.xlane.xlu0 %1659 }
 0x81e   :  { %3479 = vpow2.f32 %v1656_v2 }
 0x81f   :  { %3481 = vrcp.f32 %v1660_v1 }
 0x821   :  { %v1761_v15 = vpop.permute.xlu0 %1760 }
 0x822   :  { %v1766_v58 = vsel %vm1116_vm1, %v1761_v15, 0  ;;  %v3311_v15 = vld [vmem:[#allocation7 + $0xd8] ss:$48 sps:$4 sm:$0xff]  }
 0x828   :  { %v3480_v11 = vpop.eup %3479 }
 0x829   :  { %v3482_v18 = vpop.eup %3481  ;;  %v1661_v19 = vsel %vm1211_vm2, %v3480_v11, 0.0 }
 0x82a   :  { %v1666_v16 = vmul.f32 %v3482_v18, %v3478_v61  ;;  %1662 = vadd.xlane.f32.xlu1 %v1661_v19  ;;  %v3307_v18 = vld [vmem:[#allocation7 + $0x1c] ss:$48 sps:$4 sm:$0xff]  }
 0x82b   :  { %v3310_v19 = vld [vmem:[#allocation7 + $0x7c] ss:$48 sps:$4 sm:$0xff]  }
 0x82c   :  { %v1668_v23 = vpack.c.bf16 %v1666_v16, %v1666_v16  ;;  %v3313_v16 = vld [vmem:[#allocation7 + $0xdc] ss:$48 sps:$4 sm:$0xff]  }
 0x82e   :  { %3073 = vmatmul.mubr.msk.bf16.vlgmr.msra.gmra.mrb[12].mxu0 %vm1211_vm2, %v1668_v23  ;;  %v3316_v23 = vld [vmem:[#allocation7 + $0x13c] ss:$48 sps:$4 sm:$0xff]  }
 0x82f   :  { %3083 = vmatpush3.bf16.xpose.msra.mxu0 %v1766_v58  ;;  %3084 = vmatprep.mubr.msk.bf16.mxu0 %vm3638_vm0, %v3637_v62  ;;  %v3314_v58 = vld [vmem:[#allocation7 + $0x138] ss:$48 sps:$4 sm:$0xff]  }
 0x830   :  { %3094 = vmatprep.subr.bf16.mxu0 %v3637_v62 }
 0x83b   :  { %1757 = vrot.lane.b32.xlu1 %v3901_v39, %s3639_s3 }
 0x83f   :  { %1809 = vrot.lane.b32.xlu1 %v1547_v44, %s3639_s3 }
 0x8b7   :  { %v1663_v5 = vpop.xlane.xlu1 %1662 }
 0x8b8   :  { %3483 = vrcp.f32 %v1663_v5  ;;  %v3317_v5 = vld [vmem:[#allocation7 + $0x198] ss:$48 sps:$4 sm:$0xff]  }
 0x8bb   :  { %v1758_v21 = vpop.permute.xlu1 %1757 }
 0x8bc   :  { %3085 = vmatmul.mubr.msk.bf16.vlgmr.msra.gmra.mrb[16].mxu0 %vm1116_vm1, %v1758_v21  ;;  %v3322_v21 = vld [vmem:[#allocation7 + $0x1fc] ss:$48 sps:$4 sm:$0xff]  }
 0x8bd   :  { %3096 = vmatprep.mubr.msk.bf16.mxu0 %vm3638_vm0, %v3637_v62 }
 0x8bf   :  { %v1810_v39 = vpop.permute.xlu1 %1809 }
 0x8c2   :  { %v3484_v22 = vpop.eup %3483 }
 0x8c3   :  { %v1667_v8 = vmul.f32 %v3484_v22, %v3480_v11  ;;  %v3305_v11 = vld [vmem:[#allocation7 + $0x18] ss:$48 sps:$4 sm:$0xff]  }
 0x8c4   :  { %v3320_v22 = vld [vmem:[#allocation7 + $0x1f8] ss:$48 sps:$4 sm:$0xff]  }
 0x8c5   :  { %v1669_v24 = vpack.c.bf16 %v1667_v8, %v1667_v8  ;;  %v3325_v8 = vld [vmem:[#allocation7 + $0x25c] ss:$48 sps:$4 sm:$0xff]  }
 0x8c7   :  { %3079 = vmatmul.mubr.msk.bf16.vlgmr.msra.gmra.mrb[48].mxu1 %vm1211_vm2, %v1669_v24  ;;  %v3323_v24 = vld [vmem:[#allocation7 + $0x258] ss:$48 sps:$4 sm:$0xff]  }
 0x8c8   :  { %3089 = vmatpush3.bf16.xpose.msra.mxu1 %v1818_v27  ;;  %3090 = vmatprep.mubr.msk.bf16.mxu1 %vm3638_vm0, %v3637_v62  ;;  %v3328_v27 = vld [vmem:[#allocation7 + $0x2bc] ss:$48 sps:$4 sm:$0xff]  }
 0x8c9   :  { %3100 = vmatprep.subr.bf16.mxu1 %v3637_v62 }
 0x8cf   :  { %3091 = vmatmul.mubr.msk.bf16.vlgmr.msra.gmra.mrb[52].mxu1 %vm1116_vm1, %v1810_v39  ;;  %v3326_v39 = vld [vmem:[#allocation7 + $0x2b8] ss:$48 sps:$4 sm:$0xff]  }
 0x8d0   :  { %3102 = vmatprep.mubr.msk.bf16.mxu1 %vm3638_vm0, %v3637_v62 }
 0x901   :  { %v4033_v28 = vpop.f32.mrb[12].mxu0 }
 0x902   :  { %v3074_v10 = vpop.f32.mrb[13].mxu0 }
 0x903   :  { %v1710_v12 = vpop.f32.mrb[14].mxu0  ;;  %v3331_v10 = vld [vmem:[#allocation7 + $0x31c] ss:$48 sps:$4 sm:$0xff]  }
 0x904   :  { %v3075_v54 = vpop.f32.mrb[15].mxu0  ;;  %v3329_v12 = vld [vmem:[#allocation7 + $0x318] ss:$48 sps:$4 sm:$0xff]  }
 0x905   :  { %v3334_v54 = vld [vmem:[#allocation7 + $0x37c] ss:$48 sps:$4 sm:$0xff]  }
 0x98f   :  { %v1802_v17 = vpop.f32.mrb[16].mxu0 }
 0x990   :  { %v1860_v29 = vmul.f32 0.125, %v1802_v17  ;;  %v3086_v30 = vpop.f32.mrb[17].mxu0  ;;  %v3332_v17 = vld [vmem:[#allocation7 + $0x378] ss:$48 sps:$4 sm:$0xff]  }
 0x991   :  { %v1805_v31 = vpop.f32.mrb[18].mxu0  ;;  %v3335_v30 = vld [vmem:[#allocation7 + $0x3d8] ss:$48 sps:$4 sm:$0xff]  }
 0x992   :  { %v3087_v26 = vpop.f32.mrb[19].mxu0  ;;  %v1862_v25 = vsel %vm1211_vm2, %v1860_v29, -inf  ;;  %v3340_v31 = vld [vmem:[#allocation7 + $0x43c] ss:$48 sps:$4 sm:$0xff]  }
 0x993   :  { %1863 = vmax.xlane.f32.xlu0 %v1862_v25  ;;  %v3338_v26 = vld [vmem:[#allocation7 + $0x438] ss:$48 sps:$4 sm:$0xff]   ;;  %v3343_v25 = vld [vmem:[#allocation7 + $0x49c] ss:$48 sps:$4 sm:$0xff]  }
 0x99a   :  { %v4036_v32 = vpop.f32.mrb[48].mxu1 }
 0x99b   :  { %v3080_v33 = vpop.f32.mrb[49].mxu1 }
 0x99c   :  { %v1753_v3 = vpop.f32.mrb[50].mxu1  ;;  %v3341_v33 = vld [vmem:[#allocation7 + $0x498] ss:$48 sps:$4 sm:$0xff]  }
 0x99d   :  { %v3081_v35 = vpop.f32.mrb[51].mxu1  ;;  %v3346_v3 = vld [vmem:[#allocation7 + $0x4fc] ss:$48 sps:$4 sm:$0xff]  }
 0x99e   :  { %v3344_v35 = vld [vmem:[#allocation7 + $0x4f8] ss:$48 sps:$4 sm:$0xff]  }
 0x9a2   :  { %v1854_v41 = vpop.f32.mrb[52].mxu1 }
 0x9a3   :  { %v1861_v62 = vmul.f32 0.125, %v1854_v41  ;;  %v3092_v42 = vpop.f32.mrb[53].mxu1  ;;  %v3347_v41 = vld [vmem:[#allocation7 + $0x558] ss:$48 sps:$4 sm:$0xff]  }
 0x9a4   :  { %v1857_v44 = vpop.f32.mrb[54].mxu1 }
 0x9a5   :  { %v3093_v45 = vpop.f32.mrb[55].mxu1  ;;  %v1865_v9 = vsel %vm1211_vm2, %v1861_v62, -inf }
 0x9a6   :  { %1866 = vmax.xlane.f32.xlu1 %v1865_v9 }
 0x9b7   :  { %1934 = vrot.lane.b32.xlu1 %v3927_v4, %s3639_s3 }
 0xa20   :  { %v1864_v36 = vpop.xlane.xlu0 %1863 }
 0xa21   :  { %v1868_v37 = vsub.f32 %v1860_v29, %v1864_v36  ;;  %v3337_v29 = vld [vmem:[#allocation7 + $0x3dc] ss:$48 sps:$4 sm:$0xff]  }
 0xa22   :  { %v3352_v36 = vld [vmem:[#allocation7 + $0x5bc] ss:$48 sps:$4 sm:$0xff]  }
 0xa23   :  { %v1870_v43 = vmul.f32 1.442695, %v1868_v37  ;;  %v3350_v37 = vld [vmem:[#allocation7 + $0x5b8] ss:$48 sps:$4 sm:$0xff]  }
 0xa25   :  { %3485 = vpow2.f32 %v1870_v43  ;;  %v3353_v43 = vld [vmem:[#allocation7 + $0x20] ss:$48 sps:$4 sm:$0xff]  }
 0xa2f   :  { %v3486_v46 = vpop.eup %3485 }
 0xa30   :  { %v1874_v47 = vsel %vm1211_vm2, %v3486_v46, 0.0 }
 0xa31   :  { %1875 = vadd.xlane.f32.xlu0 %v1874_v47 }
 0xa33   :  { %v1867_v56 = vpop.xlane.xlu1 %1866 }
 0xa34   :  { %v1869_v48 = vsub.f32 %v1861_v62, %v1867_v56  ;;  %v3349_v62 = vld [vmem:[#allocation7 + $0x55c] ss:$48 sps:$4 sm:$0xff]   ;;  %v3358_v56 = vld [vmem:[#allocation7 + $0x84] ss:$48 sps:$4 sm:$0xff]  }
 0xa36   :  { %v1872_v51 = vmul.f32 1.442695, %v1869_v48 }
 0xa37   :  { %v1935_v52 = vpop.permute.xlu1 %1934 }
 0xa38   :  { %3487 = vpow2.f32 %v1872_v51  ;;  %3101 = vmatpush3.bf16.msra.mxu1 %v1935_v52 }
 0xa42   :  { %v3488_v53 = vpop.eup %3487 }
 0xa43   :  { %v1877_v7 = vsel %vm1211_vm2, %v3488_v53, 0.0 }
 0xa44   :  { %1878 = vadd.xlane.f32.xlu0 %v1877_v7 }
 0xa5a   :  { %1887 = vrot.lane.b32.xlu0 %v3931_v0, %s3639_s3  ;;  %v3308_v0 = vld [vmem:[#allocation7 + $0x78] ss:$48 sps:$4 sm:$0xff]  }
 0xabe   :  { %v1876_v4 = vpop.xlane.xlu0 %1875 }
 0xabf   :  { %3489 = vrcp.f32 %v1876_v4  ;;  %v3361_v4 = vld [vmem:[#allocation7 + $0xe4] ss:$48 sps:$4 sm:$0xff]  }
 0xac9   :  { %v3490_v59 = vpop.eup %3489 }
 0xaca   :  { %v1882_v61 = vmul.f32 %v3490_v59, %v3486_v46  ;;  %v3355_v46 = vld [vmem:[#allocation7 + $0x24] ss:$48 sps:$4 sm:$0xff]   ;;  %v3359_v59 = vld [vmem:[#allocation7 + $0xe0] ss:$48 sps:$4 sm:$0xff]  }
 0xacb   :  { %2383 = vmatprep.subr.bf16.mxu1 %v3355_v46 }
 0xacc   :  { %v1884_v63 = vpack.c.bf16 %v1882_v61, %v1882_v61  ;;  %v3362_v61 = vld [vmem:[#allocation7 + $0x140] ss:$48 sps:$4 sm:$0xff]  }
 0xad1   :  { %v1879_v60 = vpop.xlane.xlu0 %1878 }
 0xad2   :  { %3491 = vrcp.f32 %v1879_v60  ;;  %v3364_v60 = vld [vmem:[#allocation7 + $0x144] ss:$48 sps:$4 sm:$0xff]  }
 0xad5   :  { %v1888_v14 = vpop.permute.xlu0 %1887 }
 0xad6   :  { %3095 = vmatpush3.bf16.msra.mxu0 %v1888_v14  ;;  %v3367_v14 = vld [vmem:[#allocation7 + $0x1a4] ss:$48 sps:$4 sm:$0xff]  }
 0xad7   :  { %2170 = vmatprep.subr.bf16.mxu0 %v3307_v18  ;;  %v3376_v18 = vld [vmem:[#allocation7 + $0x2c4] ss:$48 sps:$4 sm:$0xff]  }
 0xad9   :  { %3097 = vmatmul.mubr.msk.bf16.vlgmr.msra.gmra.mrb[20].mxu0 %vm1211_vm2, %v1884_v63  ;;  %v3365_v63 = vld [vmem:[#allocation7 + $0x1a0] ss:$48 sps:$4 sm:$0xff]  }
 0xada   :  { %2171 = vmatpush1.bf16.msra.mxu0 %v3305_v11  ;;  %v3371_v11 = vld [vmem:[#allocation7 + $0x260] ss:$48 sps:$4 sm:$0xff]  }
 0xadb   :  { %2172 = vmatprep.subr.bf16.mxu0 %v3310_v19  ;;  %v3382_v19 = vld [vmem:[#allocation7 + $0x384] ss:$48 sps:$4 sm:$0xff]  }
 0xadc   :  { %v3492_v13 = vpop.eup %3491 }
 0xadd   :  { %v1883_v2 = vmul.f32 %v3492_v13, %v3488_v53  ;;  %v3356_v53 = vld [vmem:[#allocation7 + $0x80] ss:$48 sps:$4 sm:$0xff]   ;;  %v3370_v13 = vld [vmem:[#allocation7 + $0x204] ss:$48 sps:$4 sm:$0xff]  }
 0xade   :  { %2173 = vmatpush1.bf16.msra.mxu0 %v3308_v0  ;;  %v3380_v0 = vld [vmem:[#allocation7 + $0x380] ss:$48 sps:$4 sm:$0xff]  }
 0xadf   :  { %v1885_v1 = vpack.c.bf16 %v1883_v2, %v1883_v2  ;;  %2174 = vmatprep.subr.bf16.mxu0 %v3313_v16  ;;  %v3368_v2 = vld [vmem:[#allocation7 + $0x200] ss:$48 sps:$4 sm:$0xff]   ;;  %v3385_v16 = vld [vmem:[#allocation7 + $0x3e4] ss:$48 sps:$4 sm:$0xff]  }
 0xae1   :  { %3103 = vmatmul.mubr.msk.bf16.vlgmr.msra.gmra.mrb[56].mxu1 %vm1211_vm2, %v1885_v1  ;;  %v3373_v1 = vld [vmem:[#allocation7 + $0x264] ss:$48 sps:$4 sm:$0xff]  }
 0xae2   :  { %2175 = vmatpush1.bf16.msra.mxu0 %v3311_v15  ;;  %2384 = vmatpush1.bf16.msra.mxu1 %v3353_v43  ;;  %v3383_v15 = vld [vmem:[#allocation7 + $0x3e0] ss:$48 sps:$4 sm:$0xff]  }
 0xae3   :  { %2176 = vmatprep.subr.bf16.mxu0 %v3316_v23  ;;  %2385 = vmatprep.subr.bf16.mxu1 %v3358_v56  ;;  %v3388_v23 = vld [vmem:[#allocation7 + $0x444] ss:$48 sps:$4 sm:$0xff]  }
 0xae6   :  { %2177 = vmatpush1.bf16.msra.mxu0 %v3314_v58  ;;  %2386 = vmatpush1.bf16.msra.mxu1 %v3356_v53  ;;  %v3386_v58 = vld [vmem:[#allocation7 + $0x440] ss:$48 sps:$4 sm:$0xff]   ;;  %v3409_v53 = vld [vmem:[#allocation7 + $0xec] ss:$48 sps:$4 sm:$0xff]  }
 0xae7   :  { %2178 = vmatprep.subr.bf16.mxu0 %v3319_v20  ;;  %2387 = vmatprep.subr.bf16.mxu1 %v3361_v4  ;;  %v3391_v20 = vld [vmem:[#allocation7 + $0x4a4] ss:$48 sps:$4 sm:$0xff]   ;;  %v3410_v4 = vld [vmem:[#allocation7 + $0x148] ss:$48 sps:$4 sm:$0xff]  }
 0xaea   :  { %2179 = vmatpush1.bf16.msra.mxu0 %v3317_v5  ;;  %2388 = vmatpush1.bf16.msra.mxu1 %v3359_v59  ;;  %v3389_v5 = vld [vmem:[#allocation7 + $0x4a0] ss:$48 sps:$4 sm:$0xff]   ;;  %v3415_v59 = vld [vmem:[#allocation7 + $0x1ac] ss:$48 sps:$4 sm:$0xff]  }
 0xaeb   :  { %2180 = vmatprep.subr.bf16.mxu0 %v3322_v21  ;;  %2389 = vmatprep.subr.bf16.mxu1 %v3364_v60  ;;  %v3394_v21 = vld [vmem:[#allocation7 + $0x504] ss:$48 sps:$4 sm:$0xff]   ;;  %v3413_v60 = vld [vmem:[#allocation7 + $0x1a8] ss:$48 sps:$4 sm:$0xff]  }
 0xaee   :  { %2181 = vmatpush1.bf16.msra.mxu0 %v3320_v22  ;;  %2390 = vmatpush1.bf16.msra.mxu1 %v3362_v61  ;;  %v3392_v22 = vld [vmem:[#allocation7 + $0x500] ss:$48 sps:$4 sm:$0xff]   ;;  %v3418_v61 = vld [vmem:[#allocation7 + $0x20c] ss:$48 sps:$4 sm:$0xff]  }
 0xaef   :  { %2182 = vmatprep.subr.bf16.mxu0 %v3325_v8  ;;  %2391 = vmatprep.subr.bf16.mxu1 %v3367_v14  ;;  %v3416_v14 = vld [vmem:[#allocation7 + $0x208] ss:$48 sps:$4 sm:$0xff]  }
 0xaf2   :  { %2183 = vmatpush1.bf16.msra.mxu0 %v3323_v24  ;;  %2392 = vmatpush1.bf16.msra.mxu1 %v3365_v63  ;;  %v3421_v63 = vld [vmem:[#allocation7 + $0x26c] ss:$48 sps:$4 sm:$0xff]  }
 0xaf3   :  { %2184 = vmatprep.subr.bf16.mxu0 %v3328_v27  ;;  %2393 = vmatprep.subr.bf16.mxu1 %v3370_v13  ;;  %v3419_v13 = vld [vmem:[#allocation7 + $0x268] ss:$48 sps:$4 sm:$0xff]  }
 0xaf6   :  { %2185 = vmatpush1.bf16.msra.mxu0 %v3326_v39  ;;  %2394 = vmatpush1.bf16.msra.mxu1 %v3368_v2  ;;  %v3424_v2 = vld [vmem:[#allocation7 + $0x2cc] ss:$48 sps:$4 sm:$0xff]  }
 0xaf7   :  { %2186 = vmatprep.subr.bf16.mxu0 %v3331_v10  ;;  %2395 = vmatprep.subr.bf16.mxu1 %v3373_v1  ;;  %v3422_v1 = vld [vmem:[#allocation7 + $0x2c8] ss:$48 sps:$4 sm:$0xff]  }
 0xafa   :  { %2187 = vmatpush1.bf16.msra.mxu0 %v3329_v12  ;;  %2396 = vmatpush1.bf16.msra.mxu1 %v3371_v11  ;;  %v3427_v11 = vld [vmem:[#allocation7 + $0x32c] ss:$48 sps:$4 sm:$0xff]  }
 0xafb   :  { %2188 = vmatprep.subr.bf16.mxu0 %v3334_v54  ;;  %2397 = vmatprep.subr.bf16.mxu1 %v3376_v18  ;;  %v3425_v18 = vld [vmem:[#allocation7 + $0x328] ss:$48 sps:$4 sm:$0xff]  }
 0xafe   :  { %2189 = vmatpush1.bf16.msra.mxu0 %v3332_v17  ;;  %2398 = vmatpush1.bf16.msra.mxu1 %v3374_v40  ;;  %v3430_v40 = vld [vmem:[#allocation7 + $0x38c] ss:$48 sps:$4 sm:$0xff]  }
 0xaff   :  { %2190 = vmatprep.subr.bf16.mxu0 %v3337_v29  ;;  %2399 = vmatprep.subr.bf16.mxu1 %v3379_v57  ;;  %v3428_v57 = vld [vmem:[#allocation7 + $0x388] ss:$48 sps:$4 sm:$0xff]  }
 0xb02   :  { %2191 = vmatpush1.bf16.msra.mxu0 %v3335_v30 }
 0xb03   :  { %2192 = vmatprep.subr.bf16.mxu0 %v3340_v31 }
 0xb06   :  { %2193 = vmatpush1.bf16.msra.mxu0 %v3338_v26 }
 0xb07   :  { %2194 = vmatprep.subr.bf16.mxu0 %v3343_v25  ;;  %v3397_v25 = vld [vmem:[#allocation7 + $0x564] ss:$48 sps:$4 sm:$0xff]  }
 0xb0a   :  { %2195 = vmatpush1.bf16.msra.mxu0 %v3341_v33  ;;  %v3395_v33 = vld [vmem:[#allocation7 + $0x560] ss:$48 sps:$4 sm:$0xff]  }
 0xb0b   :  { %2196 = vmatprep.subr.bf16.mxu0 %v3346_v3  ;;  %v3398_v3 = vld [vmem:[#allocation7 + $0x5c0] ss:$48 sps:$4 sm:$0xff]  }
 0xb0e   :  { %2197 = vmatpush1.bf16.msra.mxu0 %v3344_v35  ;;  %v3403_v35 = vld [vmem:[#allocation7 + $0x2c] ss:$48 sps:$4 sm:$0xff]  }
 0xb0f   :  { %2198 = vmatprep.subr.bf16.mxu0 %v3349_v62  ;;  %v3404_v62 = vld [vmem:[#allocation7 + $0x88] ss:$48 sps:$4 sm:$0xff]  }
 0xb12   :  { %2199 = vmatpush1.bf16.msra.mxu0 %v3347_v41  ;;  %v3406_v41 = vld [vmem:[#allocation7 + $0x8c] ss:$48 sps:$4 sm:$0xff]  }
 0xb13   :  { %2200 = vmatprep.subr.bf16.mxu0 %v3352_v36 }
 0xb16   :  { %2201 = vmatpush1.bf16.msra.mxu0 %v3350_v37 }
 0xb17   :  { %2704 = vmatprep.subr.bf16.mxu0 %v3403_v35 }
 0xbac   :  { %v1927_v42 = vpop.f32.mrb[20].mxu0 }
 0xbad   :  { %v3098_v44 = vpop.f32.mrb[21].mxu0 }
 0xbae   :  { %v1930_v45 = vpop.f32.mrb[22].mxu0 }
 0xbaf   :  { %v3099_v9 = vpop.f32.mrb[23].mxu0  ;;  %v3510_v45 = vld [vmem:[#allocation8 + $0x8] sm:$0xff] }
 0xbb4   :  { %v1974_v47 = vpop.f32.mrb[56].mxu1 }
 0xbb5   :  { %v3151_v48 = vpack.i.bf16 %v1974_v47, %v1927_v42  ;;  %v3104_v51 = vpop.f32.mrb[57].mxu1 }
 0xbb6   :  { %v1977_v52 = vpop.f32.mrb[58].mxu1 }
 0xbb7   :  { %3152 = vrot.lane.b32.xlu1 %v3151_v48, %s3639_s3  ;;  %v3105_v7 = vpop.f32.mrb[59].mxu1 }
 0xbb8   :  { %v3407_v7 = vld [vmem:[#allocation7 + $0xe8] ss:$48 sps:$4 sm:$0xff]  }
 0xbbb   :  { %3157 = vrot.lane.b32.xlu1 %v3156_v34, %s3639_s3  ;;  %v3377_v34 = vld [vmem:[#allocation7 + $0x320] ss:$48 sps:$4 sm:$0xff]  }
 0xbbc   :  { %2400 = vmatpush1.bf16.msra.mxu1 %v3377_v34  ;;  %v3433_v34 = vld [vmem:[#allocation7 + $0x3ec] ss:$48 sps:$4 sm:$0xff]  }
 0xbbd   :  { %2401 = vmatprep.subr.bf16.mxu1 %v3382_v19  ;;  %v3431_v19 = vld [vmem:[#allocation7 + $0x3e8] ss:$48 sps:$4 sm:$0xff]  }
 0xbc0   :  { %2402 = vmatpush1.bf16.msra.mxu1 %v3380_v0  ;;  %v3436_v0 = vld [vmem:[#allocation7 + $0x44c] ss:$48 sps:$4 sm:$0xff]  }
 0xbc1   :  { %2403 = vmatprep.subr.bf16.mxu1 %v3385_v16  ;;  %v3434_v16 = vld [vmem:[#allocation7 + $0x448] ss:$48 sps:$4 sm:$0xff]  }
 0xbc4   :  { %2404 = vmatpush1.bf16.msra.mxu1 %v3383_v15  ;;  %v3439_v15 = vld [vmem:[#allocation7 + $0x4ac] ss:$48 sps:$4 sm:$0xff]  }
 0xbc5   :  { %2405 = vmatprep.subr.bf16.mxu1 %v3388_v23  ;;  %v3437_v23 = vld [vmem:[#allocation7 + $0x4a8] ss:$48 sps:$4 sm:$0xff]  }
 0xbc8   :  { %2406 = vmatpush1.bf16.msra.mxu1 %v3386_v58  ;;  %v3442_v58 = vld [vmem:[#allocation7 + $0x50c] ss:$48 sps:$4 sm:$0xff]  }
 0xbc9   :  { %2407 = vmatprep.subr.bf16.mxu1 %v3391_v20  ;;  %v3440_v20 = vld [vmem:[#allocation7 + $0x508] ss:$48 sps:$4 sm:$0xff]  }
 0xbcc   :  { %2408 = vmatpush1.bf16.msra.mxu1 %v3389_v5  ;;  %v3445_v5 = vld [vmem:[#allocation7 + $0x56c] ss:$48 sps:$4 sm:$0xff]  }
 0xbcd   :  { %2409 = vmatprep.subr.bf16.mxu1 %v3394_v21  ;;  %v3443_v21 = vld [vmem:[#allocation7 + $0x568] ss:$48 sps:$4 sm:$0xff]  }
 0xbd0   :  { %2410 = vmatpush1.bf16.msra.mxu1 %v3392_v22  ;;  %v3446_v22 = vld [vmem:[#allocation7 + $0x5c8] ss:$48 sps:$4 sm:$0xff]  }
 0xbd1   :  { %2411 = vmatprep.subr.bf16.mxu1 %v3397_v25 }
 0xbd4   :  { %2412 = vmatpush1.bf16.msra.mxu1 %v3395_v33 }
 0xc29   :  { %v3153_v8 = vpop.permute.xlu1 %3152 }
 0xc2a   :  { %v3155_v24 = vunpack.i.h.bf16 %v3153_v8  ;;  %v3154_v27 = vunpack.i.l.bf16 %v3153_v8  ;;  %v3448_v8 = vld [vmem:[#allocation7 + $0x5cc] ss:$48 sps:$4 sm:$0xff]  }
 0xc2c   :  { %v1998_v39 = vsel %vm1116_vm1, %v4033_v28, %v3154_v27  ;;  %v1999_v10 = vsel %vm1116_vm1, %v4036_v32, %v3155_v24  ;;  %v3400_v28 = vld [vmem:[#allocation7 + $0x5c4] ss:$48 sps:$4 sm:$0xff]   ;;  %v3401_v32 = vld [vmem:[#allocation7 + $0x28] ss:$48 sps:$4 sm:$0xff]   ;;  %v4061_v24 = vld [vmem:[#allocation8 + $0x10] sm:$0x3] }
 0xc2d   :  { %v3158_v12 = vpop.permute.xlu1 %3157  ;;  %v2001_v54 = vpack.c.bf16 %v1999_v10, %v1998_v39  ;;  %2413 = vmatprep.subr.bf16.mxu1 %v3400_v28  ;;  %v4063_v27 = vld [vmem:[#allocation8 + $0x18] sm:$0x3]  ;;  %v2218_v39 = vrot.slane %v4061_v24, %v3840_v38 }
 0xc2e   :  { %v3160_v17 = vunpack.i.h.bf16 %v3158_v12  ;;  %v3159_v29 = vunpack.i.l.bf16 %v3158_v12  ;;  %2414 = vmatpush1.bf16.msra.mxu1 %v3398_v3  ;;  %v2222_v10 = vrot.slane %v4063_v27, %v3840_v38 }
 0xc2f   :  { %2202 = vmatprep.mubr.bf16.mxu0 %v2001_v54 }
 0xc30   :  { %v1997_v30 = vsel %vm1116_vm1, %v3971_v55, %v3160_v17  ;;  %v1996_v31 = vsel %vm1116_vm1, %v3969_v50, %v3159_v29  ;;  %v2004_v50 = vsub.s32 7, %v3827_v6  ;;  %v3509_v55 = vld [vmem:[#allocation8] sm:$0xff]  ;;  %v3412_v6 = vld [vmem:[#allocation7 + $0x14c] ss:$48 sps:$4 sm:$0xff]  }
 0xc31   :  { %v2000_v26 = vpack.c.bf16 %v1997_v30, %v1996_v31 }
 0xc32   :  { %v2005_v42 = vrot.slane %v3509_v55, %v2004_v50  ;;  %v2009_v9 = vrot.slane %v3510_v45, %v2004_v50 }
 0xc33   :  { %2203 = vmatmul.mubr.bf16.vlgmr.msra.gmra.mrb[24].mxu0 %v2000_v26 }
 0xc34   :  { %2705 = vmatpush1.bf16.msra.mxu0 %v3401_v32 }
 0xc35   :  { %2706 = vmatprep.subr.bf16.mxu0 %v3406_v41 }
 0xc38   :  { %2707 = vmatpush1.bf16.msra.mxu0 %v3404_v62 }
 0xc39   :  { %2708 = vmatprep.subr.bf16.mxu0 %v3409_v53 }
 0xc3c   :  { %2709 = vmatpush1.bf16.msra.mxu0 %v3407_v7 }
 0xc3d   :  { %2710 = vmatprep.subr.bf16.mxu0 %v3412_v6 }
 0xc40   :  { %2711 = vmatpush1.bf16.msra.mxu0 %v3410_v4 }
 0xc41   :  { %2712 = vmatprep.subr.bf16.mxu0 %v3415_v59 }
 0xc44   :  { %2713 = vmatpush1.bf16.msra.mxu0 %v3413_v60 }
 0xc45   :  { %2714 = vmatprep.subr.bf16.mxu0 %v3418_v61 }
 0xc48   :  { %2715 = vmatpush1.bf16.msra.mxu0 %v3416_v14 }
 0xc49   :  { %2716 = vmatprep.subr.bf16.mxu0 %v3421_v63 }
 0xc4c   :  { %2717 = vmatpush1.bf16.msra.mxu0 %v3419_v13 }
 0xc4d   :  { %2718 = vmatprep.subr.bf16.mxu0 %v3424_v2 }
 0xc50   :  { %2719 = vmatpush1.bf16.msra.mxu0 %v3422_v1 }
 0xc51   :  { %2720 = vmatprep.subr.bf16.mxu0 %v3427_v11 }
 0xc54   :  { %2721 = vmatpush1.bf16.msra.mxu0 %v3425_v18 }
 0xc55   :  { %2722 = vmatprep.subr.bf16.mxu0 %v3430_v40 }
 0xc58   :  { %2723 = vmatpush1.bf16.msra.mxu0 %v3428_v57 }
 0xc59   :  { %2724 = vmatprep.subr.bf16.mxu0 %v3433_v34 }
 0xc5c   :  { %2725 = vmatpush1.bf16.msra.mxu0 %v3431_v19 }
 0xc5d   :  { %2726 = vmatprep.subr.bf16.mxu0 %v3436_v0 }
 0xc60   :  { %2727 = vmatpush1.bf16.msra.mxu0 %v3434_v16 }
 0xc61   :  { %2728 = vmatprep.subr.bf16.mxu0 %v3439_v15 }
 0xc64   :  { %2729 = vmatpush1.bf16.msra.mxu0 %v3437_v23 }
 0xc65   :  { %2730 = vmatprep.subr.bf16.mxu0 %v3442_v58 }
 0xc68   :  { %2731 = vmatpush1.bf16.msra.mxu0 %v3440_v20 }
 0xc69   :  { %2732 = vmatprep.subr.bf16.mxu0 %v3445_v5 }
 0xc6c   :  { %2733 = vmatpush1.bf16.msra.mxu0 %v3443_v21 }
 0xc6d   :  { %2734 = vmatprep.subr.bf16.mxu0 %v3448_v8 }
 0xc70   :  { %2735 = vmatpush1.bf16.msra.mxu0 %v3446_v22 }
 0xd06   :  { %v2204_v44 = vpop.f32.mrb[24].mxu0 }
 0xd07   :  { %v2206_v36 = vpop.f32.mrb[25].mxu0  ;;  %v2205_v43 = vadd.f32 %v2204_v44, %v2005_v42 }
 0xd08   :  { %v2208_v37 = vpop.f32.mrb[26].mxu0  ;;  %v2207_v56 = vadd.f32 %v2206_v36, %v2009_v9 }
 0xd09   :  { %v2209_v46 = vadd.f32 %v2208_v37, %v2005_v42  ;;  %v2210_v47 = vpop.f32.mrb[27].mxu0 }
 0xd0a   :  { %v2211_v48 = vadd.f32 %v2210_v47, %v2009_v9 }
 0xd0b   :  { %v2213_v51 = vpack.c.bf16 %v2209_v46, %v2205_v43 }
 0xd0c   :  { %v2214_v52 = vpack.c.bf16 %v2211_v48, %v2207_v56 }
 0xd0e   :  { %2415 = vmatprep.mubr.bf16.mxu1 %v2214_v52 }
 0xd0f   :  { %2416 = vmatmul.mubr.bf16.vlgmr.msra.gmra.mrb[60].mxu1 %v2213_v51 }
 0xde2   :  { %v2417_v12 = vpop.f32.mrb[60].mxu1 }
 0xde3   :  { %v4069_v54 = vadd.f32 %v2417_v12, %v2218_v39  ;;  %v2419_v17 = vpop.f32.mrb[61].mxu1 }
 0xde4   :  { %v4071_v29 = vadd.f32 %v2419_v17, %v2222_v10  ;;  %v2421_v30 = vpop.f32.mrb[62].mxu1 }
 0xde5   :  { %v4074_v31 = vmul.f32 0.70710677, %v4069_v54  ;;  %v4076_v26 = vadd.f32 %v2421_v30, %v2218_v39  ;;  %v2423_v25 = vpop.f32.mrb[63].mxu1 }
 0xde6   :  { %v4079_v33 = vmul.f32 0.70710677, %v4071_v29  ;;  %v4085_v3 = vadd.f32 %v2423_v25, %v2222_v10 }
 0xde7   :  { %v2442_v28 = vand.u32 2147483647, %v4074_v31  ;;  %v4083_v38 = vmul.f32 0.70710677, %v4076_v26  ;;  %vm2434_vm3 = vcmp.ge.f32.partialorder %v4074_v31, 0.0 }
 0xde8   :  { %v2443_v32 = vand.u32 2147483647, %v4079_v33  ;;  %v4090_v55 = vmul.f32 0.70710677, %v4085_v3  ;;  %vm2435_vm4 = vcmp.ge.f32.partialorder %v4079_v33, 0.0 }
 0xde9   :  { %v2446_v35 = vmul.f32 0.3275911, %v2442_v28  ;;  %v2444_v62 = vand.u32 2147483647, %v4083_v38  ;;  %v2498_v43 = vsub.f32 0.0, %v2442_v28  ;;  %vm2436_vm5 = vcmp.ge.f32.partialorder %v4083_v38, 0.0 }
 0xdea   :  { %v2447_v41 = vmul.f32 0.3275911, %v2443_v32  ;;  %v2445_v45 = vand.u32 2147483647, %v4090_v55  ;;  %v2499_v46 = vsub.f32 0.0, %v2443_v32  ;;  %vm2437_vm6 = vcmp.ge.f32.partialorder %v4090_v55, 0.0 }
 0xdeb   :  { %v2450_v50 = vadd.f32 1.0, %v2446_v35  ;;  %v2448_v44 = vmul.f32 0.3275911, %v2444_v62  ;;  %v2502_v56 = vmul.f32 %v2498_v43, %v2442_v28  ;;  %v2500_v48 = vsub.f32 0.0, %v2444_v62 }
 0xdec   :  { %v2451_v42 = vadd.f32 1.0, %v2447_v41  ;;  %v2449_v36 = vmul.f32 0.3275911, %v2445_v45  ;;  %v2503_v53 = vmul.f32 %v2499_v46, %v2443_v32  ;;  %v2501_v6 = vsub.f32 0.0, %v2445_v45 }
 0xded   :  { %3493 = vrcp.f32 %v2450_v50  ;;  %v2452_v9 = vadd.f32 1.0, %v2448_v44  ;;  %v2506_v60 = vmul.f32 1.442695, %v2502_v56  ;;  %v2504_v14 = vmul.f32 %v2500_v48, %v2444_v62 }
 0xdee   :  { %3495 = vrcp.f32 %v2451_v42  ;;  %v2453_v37 = vadd.f32 1.0, %v2449_v36  ;;  %v2508_v13 = vmul.f32 1.442695, %v2503_v53  ;;  %v2505_v18 = vmul.f32 %v2501_v6, %v2445_v45 }
 0xdef   :  { %3497 = vrcp.f32 %v2452_v9  ;;  %v2510_v0 = vmul.f32 1.442695, %v2504_v14 }
 0xdf0   :  { %3499 = vrcp.f32 %v2453_v37  ;;  %v2512_v20 = vmul.f32 1.442695, %v2505_v18 }
 0xdf1   :  { %3501 = vpow2.f32 %v2506_v60 }
 0xdf2   :  { %3503 = vpow2.f32 %v2508_v13 }
 0xdf3   :  { %3505 = vpow2.f32 %v2510_v0  ;;  %v2429_v0 = vmul.f32 0.5, %v4085_v3 }
 0xdf4   :  { %3507 = vpow2.f32 %v2512_v20 }
 0xdf7   :  { %v3494_v47 = vpop.eup %3493 }
 0xdf8   :  { %v3496_v51 = vpop.eup %3495  ;;  %v2462_v52 = vmul.f32 1.0614054, %v3494_v47 }
 0xdf9   :  { %v2463_v7 = vmul.f32 1.0614054, %v3496_v51  ;;  %v3498_v59 = vpop.eup %3497 }
 0xdfa   :  { %v2466_v4 = vadd.f32 -1.4531521, %v2462_v52  ;;  %v2464_v2 = vmul.f32 1.0614054, %v3498_v59  ;;  %v3500_v1 = vpop.eup %3499  ;;  %v3640_v52 = vmov -1.0  }
 0xdfb   :  { %v2467_v61 = vadd.f32 -1.4531521, %v2463_v7  ;;  %v2465_v34 = vmul.f32 1.0614054, %v3500_v1  ;;  %v3502_v50 = vpop.eup %3501  ;;  %v2438_v53 = vsel %vm2434_vm3, 1.0, %v3640_v52  ;;  %v2439_v31 = vsel %vm2435_vm4, 1.0, %v3640_v52 }
 0xdfc   :  { %v2470_v63 = vmul.f32 %v3494_v47, %v2466_v4  ;;  %v2468_v57 = vadd.f32 -1.4531521, %v2464_v2  ;;  %v3504_v44 = vpop.eup %3503  ;;  %v2426_v2 = vmul.f32 0.5, %v4069_v54  ;;  %v2539_v54 = vrot.slane %v4061_v24, %v3850_v49 }
 0xdfd   :  { %v2471_v11 = vmul.f32 %v3496_v51, %v2467_v61  ;;  %v2469_v23 = vadd.f32 -1.4531521, %v2465_v34  ;;  %v3506_v48 = vpop.eup %3505 }
 0xdfe   :  { %v2474_v40 = vadd.f32 1.4214138, %v2470_v63  ;;  %v2472_v15 = vmul.f32 %v3498_v59, %v2468_v57  ;;  %v3508_v4 = vpop.eup %3507  ;;  %v2440_v63 = vsel %vm2436_vm5, 1.0, %v3640_v52 }
 0xdff   :  { %v2475_v19 = vadd.f32 1.4214138, %v2471_v11  ;;  %v2473_v22 = vmul.f32 %v3500_v1, %v2469_v23  ;;  %v2441_v11 = vsel %vm2437_vm6, 1.0, %v3640_v52 }
 0xe00   :  { %v2478_v16 = vmul.f32 %v3494_v47, %v2474_v40  ;;  %v2476_v21 = vadd.f32 1.4214138, %v2472_v15  ;;  %v2428_v40 = vmul.f32 0.5, %v4076_v26  ;;  %v2543_v26 = vrot.slane %v4063_v27, %v3850_v49 }
 0xe01   :  { %v2479_v58 = vmul.f32 %v3496_v51, %v2475_v19  ;;  %v2477_v12 = vadd.f32 1.4214138, %v2473_v22 }
 0xe02   :  { %v2482_v5 = vadd.f32 -0.28449672, %v2478_v16  ;;  %v2480_v10 = vmul.f32 %v3498_v59, %v2476_v21 }
 0xe03   :  { %v2483_v8 = vadd.f32 -0.28449672, %v2479_v58  ;;  %v2481_v28 = vmul.f32 %v3500_v1, %v2477_v12 }
 0xe04   :  { %v2486_v39 = vmul.f32 %v3494_v47, %v2482_v5  ;;  %v2484_v25 = vadd.f32 -0.28449672, %v2480_v10 }
 0xe05   :  { %v2487_v17 = vmul.f32 %v3496_v51, %v2483_v8  ;;  %v2485_v62 = vadd.f32 -0.28449672, %v2481_v28 }
 0xe06   :  { %v2490_v30 = vadd.f32 0.2548296, %v2486_v39  ;;  %v2488_v41 = vmul.f32 %v3498_v59, %v2484_v25 }
 0xe07   :  { %v2491_v32 = vadd.f32 0.2548296, %v2487_v17  ;;  %v2489_v36 = vmul.f32 %v3500_v1, %v2485_v62 }
 0xe08   :  { %v2494_v35 = vmul.f32 %v3494_v47, %v2490_v30  ;;  %v2492_v9 = vadd.f32 0.2548296, %v2488_v41 }
 0xe09   :  { %v2495_v42 = vmul.f32 %v3496_v51, %v2491_v32  ;;  %v2493_v56 = vadd.f32 0.2548296, %v2489_v36 }
 0xe0a   :  { %v2514_v45 = vmul.f32 %v3502_v50, %v2494_v35  ;;  %v2496_v46 = vmul.f32 %v3498_v59, %v2492_v9 }
 0xe0b   :  { %v2515_v37 = vmul.f32 %v3504_v44, %v2495_v42  ;;  %v2497_v6 = vmul.f32 %v3500_v1, %v2493_v56  ;;  %v2427_v1 = vmul.f32 0.5, %v4071_v29 }
 0xe0c   :  { %v2518_v43 = vsub.f32 1.0, %v2514_v45  ;;  %v2516_v51 = vmul.f32 %v3506_v48, %v2496_v46 }
 0xe0d   :  { %v2519_v47 = vsub.f32 1.0, %v2515_v37  ;;  %v2517_v14 = vmul.f32 %v3508_v4, %v2497_v6 }
 0xe0e   :  { %v2522_v7 = vmul.f32 %v2518_v43, %v2438_v53  ;;  %v2520_v61 = vsub.f32 1.0, %v2516_v51 }
 0xe0f   :  { %v2523_v60 = vmul.f32 %v2519_v47, %v2439_v31  ;;  %v2521_v13 = vsub.f32 1.0, %v2517_v14 }
 0xe10   :  { %v2526_v33 = vadd.f32 1.0, %v2522_v7  ;;  %v2524_v59 = vmul.f32 %v2520_v61, %v2440_v63 }
 0xe11   :  { %v2527_v18 = vadd.f32 1.0, %v2523_v60  ;;  %v2525_v57 = vmul.f32 %v2521_v13, %v2441_v11 }
 0xe12   :  { %v2528_v38 = vadd.f32 1.0, %v2524_v59  ;;  %v2530_v34 = vmul.f32 %v2526_v33, %v2426_v2 }
 0xe13   :  { %v2529_v55 = vadd.f32 1.0, %v2525_v57  ;;  %v2531_v16 = vmul.f32 %v2527_v18, %v2427_v1 }
 0xe14   :  { %v2532_v19 = vmul.f32 %v2528_v38, %v2428_v40 }
 0xe15   :  { %v2533_v23 = vmul.f32 %v2529_v55, %v2429_v0 }
 0xe16   :  { %v2534_v15 = vpack.c.bf16 %v2532_v19, %v2530_v34 }
 0xe17   :  { %v2535_v58 = vpack.c.bf16 %v2533_v23, %v2531_v16 }
 0xe19   :  { %2736 = vmatprep.mubr.bf16.mxu0 %v2535_v58 }
 0xe1a   :  { %2737 = vmatmul.mubr.bf16.vlgmr.msra.gmra.mrb[28].mxu0 %v2534_v15 }
 0xeed   :  { %v2738_v20 = vpop.f32.mrb[28].mxu0 }
 0xeee   :  { %v2739_v5 = vadd.f32 %v2738_v20, %v2539_v54  ;;  %v2740_v29 = vpop.f32.mrb[29].mxu0 }
 0xeef   :  { %v2741_v21 = vadd.f32 %v2740_v29, %v2543_v26  ;;  %v2742_v3 = vpop.f32.mrb[30].mxu0 }
 0xef0   :  { %2747 = vst [vmem:[#allocation10] sm:$0xff] %v2739_v5  ;;  %v2743_v22 = vadd.f32 %v2742_v3, %v2539_v54  ;;  %v2744_v8 = vpop.f32.mrb[31].mxu0 }
 0xef1   :  { %2748 = vst [vmem:[#allocation10 + $0x8] sm:$0xff] %v2741_v21  ;;  %v2745_v39 = vadd.f32 %v2744_v8, %v2543_v26 }
 0xef2   :  { %2749 = vst [vmem:[#allocation10 + $0x10] sm:$0xff] %v2743_v22 }
 0xef3   :  { %2750 = vst [vmem:[#allocation10 + $0x18] sm:$0xff] %v2745_v39 }
 0xef4   :  { %3610 = shalt.err (!%p3607_p8)
}
 0xef5   :  { %s3611_s19 = scalar_lea.hbm %s4124_s4, 512 }
 0xef6   :  { %p3612_p9 = scmp.ne.s32.totalorder %s4124_s4, %s3611_s19  ;;  %p3615_p10 = scmp.lt.u32.totalorder %s3611_s19, %s4124_s4 }
 0xef8   :  { %p3617_p11 = pnand %p3615_p10, %p3612_p9 }
 0xefa   :  { %3620 = shalt.err (!%p3617_p11)
}
 0xefb   :  { %2762 = dma.vmem_to_hbm [thread:$0]  %s2757_s14, 512, %s4124_s4, [#allocation4], %s3631_s27, %s3631_s27, %s3632_s28  }
 0xefc   :  { %3627 = dma.done.wait [#allocation4], 512  }
 0xefd   :  { %3628 = vsyncadd [#allocation4], 4294966784 }
 0xefe   :  { %2766 = vsyncpa [#allocation3], 1 }
 0xeff   :  { %2767 = vsyncpa [#allocation6], 1 }
 0xf00   :  { %2768 = vsyncpa [#allocation9], 1 }
 0xf01   :  { %2769 = vsyncpa [#allocation4], 1 }

</bundles_post_ra>
